<compile_context>
chip_gen: v6e
topology: v6e:2x2x1
jax: 0.10.0
libtpu: 0.0.40
codegen_flags: <defaults>
</compile_context>

<pallas_src>
import functools

import jax
import jax.numpy as jnp
from jax.experimental import pallas as pl
from jax.experimental.pallas import tpu as pltpu


# 32 MiB scoped VMEM: safely below physical VMEM on v5e/v6e (128 MiB) and
# v7x (64 MiB); tiles below are sized so double-buffered inputs fit easily.
_VMEM_LIMIT = 32 * 1024 * 1024


def _round_up(x, m):
    return ((x + m - 1) // m) * m


def _pad_axis(arr, axis, target):
    pad = target - arr.shape[axis]
    if pad == 0:
        return arr
    widths = [(0, 0)] * arr.ndim
    widths[axis] = (0, pad)
    return jnp.pad(arr, widths)


# ----------------------------------------------------------------------------
# Kernel 1: tiled matmul with fused epilogues
#   (a) bias-only:            out = A @ B + bias
#   (b) BN + residual:        out = (A @ B) * scale + bias + residual
#   grid = (M/tm, N/tn, K/tk); f32 accumulator scratch; bf16 operands on MXU.
# ----------------------------------------------------------------------------

def _mm_bias_kernel(a_ref, b_ref, c_ref, o_ref, acc_ref):
    @pl.when(pl.program_id(2) == 0)
    def _():
        acc_ref[...] = jnp.zeros_like(acc_ref)

    acc_ref[...] += jnp.dot(a_ref[...], b_ref[...],
                            preferred_element_type=jnp.float32)

    @pl.when(pl.program_id(2) == pl.num_programs(2) - 1)
    def _():
        o_ref[...] = (acc_ref[...] + c_ref[...]).astype(o_ref.dtype)


def _mm_bn_res_kernel(a_ref, b_ref, s_ref, c_ref, r_ref, o_ref, acc_ref):
    @pl.when(pl.program_id(2) == 0)
    def _():
        acc_ref[...] = jnp.zeros_like(acc_ref)

    acc_ref[...] += jnp.dot(a_ref[...], b_ref[...],
                            preferred_element_type=jnp.float32)

    @pl.when(pl.program_id(2) == pl.num_programs(2) - 1)
    def _():
        o_ref[...] = (acc_ref[...] * s_ref[...] + c_ref[...]
                      + r_ref[...].astype(jnp.float32)).astype(o_ref.dtype)


def fused_matmul(a, b, *, bias, scale=None, residual=None,
                 out_dtype=jnp.bfloat16):
    """out = (a @ b) [*scale] + bias [+ residual].  K, N must be 128-aligned."""
    M, K = a.shape
    K2, N = b.shape
    assert K == K2 and K % 128 == 0 and N % 128 == 0

    # Tile sizes: large M tiles for roofline, but keep >=2 parallel grid units
    # when possible (megacore on v7x).
    if M >= 1024:
        tm = 512
    elif M >= 256:
        tm = 256
    else:
        tm = _round_up(M, 16)
    Mp = _round_up(M, tm)
    tk = 256 if K % 256 == 0 else 128
    tn = N if N <= 512 else (256 if N % 256 == 0 else 128)

    a_p = _pad_axis(a, 0, Mp).astype(jnp.bfloat16)
    b_c = b.astype(jnp.bfloat16)
    c2 = bias.reshape(1, N).astype(jnp.float32)

    if scale is None and residual is None:
        kernel = _mm_bias_kernel
        in_specs = [
            pl.BlockSpec((tm, tk), lambda i, j, k: (i, k)),
            pl.BlockSpec((tk, tn), lambda i, j, k: (k, j)),
            pl.BlockSpec((1, tn), lambda i, j, k: (0, j)),
        ]
        args = [a_p, b_c, c2]
        extra_bytes = 0
    else:
        assert scale is not None and residual is not None
        kernel = _mm_bn_res_kernel
        s2 = scale.reshape(1, N).astype(jnp.float32)
        # Residual streamed as bf16: halves its HBM traffic on this
        # bandwidth-bound GEMM; cast back to f32 inside the epilogue.
        r_p = _pad_axis(residual, 0, Mp).astype(jnp.bfloat16)
        in_specs = [
            pl.BlockSpec((tm, tk), lambda i, j, k: (i, k)),
            pl.BlockSpec((tk, tn), lambda i, j, k: (k, j)),
            pl.BlockSpec((1, tn), lambda i, j, k: (0, j)),
            pl.BlockSpec((1, tn), lambda i, j, k: (0, j)),
            pl.BlockSpec((tm, tn), lambda i, j, k: (i, j)),
        ]
        args = [a_p, b_c, s2, c2, r_p]
        extra_bytes = Mp * N * 2

    bytes_acc = (a_p.size * 2 + b_c.size * 2 + extra_bytes
                 + Mp * N * jnp.dtype(out_dtype).itemsize)

    out = pl.pallas_call(
        kernel,
        out_shape=jax.ShapeDtypeStruct((Mp, N), out_dtype),
        grid_spec=pltpu.PrefetchScalarGridSpec(
            num_scalar_prefetch=0,
            grid=(Mp // tm, N // tn, K // tk),
            in_specs=in_specs,
            out_specs=pl.BlockSpec((tm, tn), lambda i, j, k: (i, j)),
            scratch_shapes=[pltpu.VMEM((tm, tn), jnp.float32)]),
        compiler_params=pltpu.CompilerParams(
            dimension_semantics=("parallel", "parallel", "arbitrary"),
            vmem_limit_bytes=_VMEM_LIMIT),
        cost_estimate=pl.CostEstimate(flops=2 * Mp * N * K, transcendentals=0,
                                      bytes_accessed=bytes_acc),
    )(*args)
    return out[:M]


# ----------------------------------------------------------------------------
# Kernel 2: fused affinity + softmax + aggregation
#   f = theta @ phi^T ; p = softmax(f, axis=-1) ; y = p @ g
#
#   (a) single-KV-step kernel: whole (pooled) KV resident in VMEM, read once
#       per batch; plain softmax (no online-softmax rescale work).
#   (b) flash-style fallback for large KV: online softmax over lane-dense KV
#       tiles, grid = (B, Sq/tq, Skv/tkv).
# ----------------------------------------------------------------------------

def _nl_attn_single_kernel(theta_ref, phi_ref, g_ref, o_ref, *,
                           skv_valid, skvp):
    q = theta_ref[0]                                   # [tq, D]     bf16
    k = phi_ref[0]                                     # [skvp, D]   bf16
    s = jax.lax.dot_general(q, k, (((1,), (1,)), ((), ())),
                            preferred_element_type=jnp.float32)   # [tq, skvp]

    if skvp != skv_valid:                              # static: only if padded
        col = jax.lax.broadcasted_iota(jnp.int32, s.shape, 1)
        s = jnp.where(col < skv_valid, s, -1e30)

    m = s.max(axis=-1, keepdims=True)
    p = jnp.exp(s - m)
    l = p.sum(axis=-1, keepdims=True)
    y = jnp.dot(p.astype(g_ref.dtype), g_ref[0],
                preferred_element_type=jnp.float32)
    o_ref[0] = (y * pl.reciprocal(l, approx=True)).astype(o_ref.dtype)


def _nl_attn_flash_kernel(theta_ref, phi_ref, g_ref, o_ref,
                          m_sc, l_sc, acc_sc, *, skv_valid, tkv, need_mask):
    kv = pl.program_id(2)

    @pl.when(kv == 0)
    def _():
        m_sc[...] = jnp.full_like(m_sc, -jnp.inf)
        l_sc[...] = jnp.zeros_like(l_sc)
        acc_sc[...] = jnp.zeros_like(acc_sc)

    q = theta_ref[0]                                   # [tq, D]   bf16
    k = phi_ref[0]                                     # [tkv, D]  bf16
    s = jax.lax.dot_general(q, k, (((1,), (1,)), ((), ())),
                            preferred_element_type=jnp.float32)   # [tq, tkv]

    if need_mask:                                      # static: only if padded
        col = kv * tkv + jax.lax.broadcasted_iota(jnp.int32, s.shape, 1)
        s = jnp.where(col < skv_valid, s, -1e30)

    m_prev = m_sc[...]
    m_new = jnp.maximum(m_prev, s.max(axis=-1, keepdims=True))
    alpha = jnp.exp(m_prev - m_new)
    p = jnp.exp(s - m_new)
    l_sc[...] = alpha * l_sc[...] + p.sum(axis=-1, keepdims=True)
    acc_sc[...] = alpha * acc_sc[...] + jnp.dot(
        p.astype(g_ref.dtype), g_ref[0], preferred_element_type=jnp.float32)
    m_sc[...] = m_new

    @pl.when(kv == pl.num_programs(2) - 1)
    def _():
        o_ref[0] = (acc_sc[...] * pl.reciprocal(l_sc[...], approx=True)
                    ).astype(o_ref.dtype)


def nl_attention(theta, phi, g):
    """theta: [B,Sq,D], phi/g: [B,Skv,D] -> y: [B,Sq,D] (bf16)."""
    B, Sq, D = theta.shape
    Skv = phi.shape[1]
    assert D % 128 == 0

    tq = min(256, _round_up(Sq, 16))
    Sqp = _round_up(Sq, tq)
    Skvp = _round_up(Skv, 128)                         # lane-dense KV padding

    theta_p = _pad_axis(theta, 1, Sqp).astype(jnp.bfloat16)

    # Budget check: phi+g resident (bf16, double-buffered) + f32 score tile.
    kv_bytes = 2 * Skvp * D * 2 * 2 + tq * Skvp * 4
    single_kv = kv_bytes <= 12 * 1024 * 1024

    if single_kv:
        phi_p = _pad_axis(phi, 1, Skvp).astype(jnp.bfloat16)
        g_p = _pad_axis(g, 1, Skvp).astype(jnp.bfloat16)
        kernel = functools.partial(_nl_attn_single_kernel,
                                   skv_valid=Skv, skvp=Skvp)
        out = pl.pallas_call(
            kernel,
            out_shape=jax.ShapeDtypeStruct((B, Sqp, D), jnp.bfloat16),
            grid_spec=pltpu.PrefetchScalarGridSpec(
                num_scalar_prefetch=0,
                grid=(B, Sqp // tq),
                in_specs=[
                    pl.BlockSpec((1, tq, D), lambda b, qi: (b, qi, 0)),
                    # Constant block index across q-tiles -> KV DMA'd once/batch.
                    pl.BlockSpec((1, Skvp, D), lambda b, qi: (b, 0, 0)),
                    pl.BlockSpec((1, Skvp, D), lambda b, qi: (b, 0, 0)),
                ],
                out_specs=pl.BlockSpec((1, tq, D), lambda b, qi: (b, qi, 0))),
            compiler_params=pltpu.CompilerParams(
                dimension_semantics=("parallel", "parallel"),
                vmem_limit_bytes=_VMEM_LIMIT),
            cost_estimate=pl.CostEstimate(
                flops=4 * B * Sqp * Skvp * D,
                transcendentals=B * Sqp * Skvp,
                bytes_accessed=2 * (theta_p.size + phi_p.size + g_p.size
                                    + B * Sqp * D)),
        )(theta_p, phi_p, g_p)
        return out[:, :Sq, :]

    # ---- flash-style fallback for very large KV ----
    tkv = 512
    Skvp = _round_up(Skv, tkv)
    phi_p = _pad_axis(phi, 1, Skvp).astype(jnp.bfloat16)
    g_p = _pad_axis(g, 1, Skvp).astype(jnp.bfloat16)
    kernel = functools.partial(_nl_attn_flash_kernel, skv_valid=Skv, tkv=tkv,
                               need_mask=(Skvp != Skv))
    out = pl.pallas_call(
        kernel,
        out_shape=jax.ShapeDtypeStruct((B, Sqp, D), jnp.bfloat16),
        grid_spec=pltpu.PrefetchScalarGridSpec(
            num_scalar_prefetch=0,
            grid=(B, Sqp // tq, Skvp // tkv),
            in_specs=[pl.BlockSpec((1, tq, D), lambda b, qi, ki: (b, qi, 0)),
                      pl.BlockSpec((1, tkv, D), lambda b, qi, ki: (b, ki, 0)),
                      pl.BlockSpec((1, tkv, D), lambda b, qi, ki: (b, ki, 0))],
            out_specs=pl.BlockSpec((1, tq, D), lambda b, qi, ki: (b, qi, 0)),
            scratch_shapes=[pltpu.VMEM((tq, 1), jnp.float32),
                            pltpu.VMEM((tq, 1), jnp.float32),
                            pltpu.VMEM((tq, D), jnp.float32)]),
        compiler_params=pltpu.CompilerParams(
            dimension_semantics=("parallel", "parallel", "arbitrary"),
            vmem_limit_bytes=_VMEM_LIMIT),
        cost_estimate=pl.CostEstimate(
            flops=4 * B * Sqp * Skvp * D,
            transcendentals=B * Sqp * Skvp,
            bytes_accessed=2 * (theta_p.size
                                + (Sqp // tq) * (phi_p.size + g_p.size)
                                + B * Sqp * D)),
    )(theta_p, phi_p, g_p)
    return out[:, :Sq, :]


# ----------------------------------------------------------------------------
# Non-local block forward (wrapper glue)
# ----------------------------------------------------------------------------

def non_local_block_forward(params, x_nchw, sub_sample=True):
    B, C, H, W = x_nchw.shape
    Cp, Ip = params['w_theta'].shape            # padded in / inter channels

    x = jnp.transpose(x_nchw, (0, 2, 3, 1)).astype(jnp.float32)      # NHWC
    x_flat = _pad_axis(x.reshape(B * H * W, C), 1, Cp)               # [M, Cp]

    # Fused theta|phi|g 1x1-conv embedding: one GEMM, x read from HBM once.
    proj = fused_matmul(x_flat, params['w_proj'], bias=params['b_proj'])
    theta = proj[:, :Ip].reshape(B, H * W, Ip)

    if sub_sample:
        # MaxPool2d(2,2) after g(x)/phi(x) — single pooling pass over the
        # concatenated phi||g slab (bf16), plain-JAX glue.
        phi_g = proj[:, Ip:].reshape(B, H, W, 2 * Ip)
        pooled = jnp.max(phi_g.reshape(B, H // 2, 2, W // 2, 2, 2 * Ip),
                         axis=(2, 4))
        phi = pooled[..., :Ip].reshape(B, -1, Ip)
        g = pooled[..., Ip:].reshape(B, -1, Ip)
    else:
        phi = proj[:, Ip:2 * Ip].reshape(B, H * W, Ip)
        g = proj[:, 2 * Ip:].reshape(B, H * W, Ip)

    # f = theta @ phi^T, softmax over positions, y = f_div_C @ g  (fused).
    y = nl_attention(theta, phi, g)                                  # [B,HW,Ip]

    # W (1x1 conv) + folded BN + residual:  z = BN(W(y)) + x
    z_flat = fused_matmul(y.reshape(B * H * W, Ip), params['w_W'],
                          bias=params['bn_bias'], scale=params['bn_scale'],
                          residual=x_flat, out_dtype=jnp.float32)
    z = z_flat.reshape(B, H, W, Cp)[..., :C]
    return jnp.transpose(z, (0, 3, 1, 2))                            # NCHW


# ----------------------------------------------------------------------------
# Pure-JAX reference (mirrors the kernel's bf16 rounding points)
# ----------------------------------------------------------------------------

def reference_forward(params, x_nchw, sub_sample=True):
    bf = lambda t: t.astype(jnp.bfloat16)
    B, C, H, W = x_nchw.shape
    Cp, Ip = params['w_theta'].shape

    x = jnp.transpose(x_nchw, (0, 2, 3, 1)).astype(jnp.float32)
    xf = _pad_axis(x.reshape(B * H * W, C), 1, Cp)

    def conv(w, b):
        out = jnp.dot(bf(xf), bf(w), preferred_element_type=jnp.float32) + b[None, :]
        return bf(out)

    theta = conv(params['w_theta'], params['b_theta']).reshape(B, H * W, Ip)
    phi = conv(params['w_phi'], params['b_phi']).reshape(B, H, W, Ip)
    g = conv(params['w_g'], params['b_g']).reshape(B, H, W, Ip)
    if sub_sample:
        phi = jnp.max(phi.reshape(B, H // 2, 2, W // 2, 2, Ip), axis=(2, 4))
        g = jnp.max(g.reshape(B, H // 2, 2, W // 2, 2, Ip), axis=(2, 4))
    phi = phi.reshape(B, -1, Ip)
    g = g.reshape(B, -1, Ip)

    f = jnp.einsum('bqd,bkd->bqk', theta, phi,
                   preferred_element_type=jnp.float32)
    p = jax.nn.softmax(f, axis=-1)
    y = bf(jnp.einsum('bqk,bkd->bqd', bf(p), g,
                      preferred_element_type=jnp.float32))

    wy = jnp.dot(bf(y.reshape(B * H * W, Ip)), bf(params['w_W']),
                 preferred_element_type=jnp.float32)
    res = bf(xf).astype(jnp.float32)          # kernel streams residual as bf16
    z = wy * params['bn_scale'][None, :] + params['bn_bias'][None, :] + res
    z = z.reshape(B, H, W, Cp)[..., :C]
    return jnp.transpose(z, (0, 3, 1, 2))


# ----------------------------------------------------------------------------
# Deterministic synthetic parameters (no checkpoint)
# ----------------------------------------------------------------------------

def build_params(key, in_channels, inter_channels=None, eps=1e-5):
    if inter_channels is None:
        inter_channels = in_channels // 2
        if inter_channels == 0:
            inter_channels = 1
    Cp = _round_up(in_channels, 128)
    Ip = _round_up(inter_channels, 128)
    ks = jax.random.split(key, 12)

    def conv1x1(kw, kb, cin, cout, cin_p, cout_p):
        w = jax.random.normal(kw, (cin, cout), jnp.float32) * (1.0 / cin) ** 0.5
        b = 0.1 * jax.random.normal(kb, (cout,), jnp.float32)
        wp = jnp.zeros((cin_p, cout_p), jnp.float32).at[:cin, :cout].set(w)
        bp = jnp.zeros((cout_p,), jnp.float32).at[:cout].set(b)
        return wp, bp

    w_theta, b_theta = conv1x1(ks[0], ks[1], in_channels, inter_channels, Cp, Ip)
    w_phi, b_phi = conv1x1(ks[2], ks[3], in_channels, inter_channels, Cp, Ip)
    w_g, b_g = conv1x1(ks[4], ks[5], in_channels, inter_channels, Cp, Ip)
    w_W, b_W = conv1x1(ks[6], ks[7], inter_channels, in_channels, Ip, Cp)

    # BatchNorm (inference / running-stat) folded with the W-conv bias into a
    # per-channel scale/bias epilogue.
    # NOTE: the PyTorch module initializes this BN's gamma/beta to zero (block
    # starts as identity); we use non-trivial values so the W-path is exercised.
    gamma = jax.random.uniform(ks[8], (in_channels,), jnp.float32, 0.5, 1.5)
    beta = 0.1 * jax.random.normal(ks[9], (in_channels,), jnp.float32)
    mean = 0.1 * jax.random.normal(ks[10], (in_channels,), jnp.float32)
    var = jax.random.uniform(ks[11], (in_channels,), jnp.float32, 0.5, 1.5)
    scale = gamma / jnp.sqrt(var + eps)
    bias = beta + (b_W[:in_channels] - mean) * scale
    bn_scale = jnp.zeros((Cp,), jnp.float32).at[:in_channels].set(scale)
    bn_bias = jnp.zeros((Cp,), jnp.float32).at[:in_channels].set(bias)

    return {
        'w_theta': w_theta, 'b_theta': b_theta,
        'w_phi': w_phi, 'b_phi': b_phi,
        'w_g': w_g, 'b_g': b_g,
        # pre-fused theta|phi|g projection (single GEMM in the forward pass)
        'w_proj': jnp.concatenate([w_theta, w_phi, w_g], axis=1),
        'b_proj': jnp.concatenate([b_theta, b_phi, b_g]),
        'w_W': w_W, 'bn_scale': bn_scale, 'bn_bias': bn_bias,
    }


# ----------------------------------------------------------------------------

if __name__ == "__main__":
    key = jax.random.PRNGKey(0)
    pkey, xkey = jax.random.split(key)

    B, C, H, W = 2, 4, 16, 16          # NCHW, as in the PyTorch module (2-D case)
    params = build_params(pkey, in_channels=C)
    x = jax.random.normal(xkey, (B, C, H, W), dtype=jnp.float32)

    fwd = jax.jit(functools.partial(non_local_block_forward, sub_sample=True))
    z = jax.block_until_ready(fwd(params, x))

    assert z.shape == (B, C, H, W), z.shape
    assert bool(jnp.all(jnp.isfinite(z)))

    z_ref = reference_forward(params, x, sub_sample=True)
    max_err = float(jnp.max(jnp.abs(z - z_ref)))
    assert bool(jnp.allclose(z, z_ref, atol=5e-2, rtol=5e-2)), max_err

    print("KERNEL_OK")
</pallas_src>

<mosaic_0001>
module attributes {stable_mosaic.version = 11 : i64} {
  func.func @_mm_bias_kernel(%arg0: i32, %arg1: i32, %arg2: i32, %arg3: memref<256x128xbf16, #tpu.memory_space<vmem>>, %arg4: memref<128x384xbf16, #tpu.memory_space<vmem>>, %arg5: memref<1x384xf32, #tpu.memory_space<vmem>>, %arg6: memref<256x384xbf16, #tpu.memory_space<vmem>>, %arg7: memref<256x384xf32, #tpu.memory_space<vmem>>) attributes {dimension_semantics = [#tpu.dimension_semantics<parallel>, #tpu.dimension_semantics<parallel>, #tpu.dimension_semantics<arbitrary>], iteration_bounds = array<i64: 2, 1, 1>, scalar_prefetch = 0 : i64, scratch_operands = 1 : i64, tpu.core_type = #tpu.core_type<tc>, window_params = [{transform_indices = @transform_0, window_bounds = array<i64: 256, 128>}, {transform_indices = @transform_1, window_bounds = array<i64: 128, 384>}, {transform_indices = @transform_2, window_bounds = array<i64: 1, 384>}, {transform_indices = @transform_3, window_bounds = array<i64: 256, 384>}]} {
    %c0_i32 = arith.constant 0 : i32
    %0 = arith.cmpi eq, %arg2, %c0_i32 : i32
    %1 = arith.extui %0 : i1 to i32
    %c0_i32_0 = arith.constant 0 : i32
    %2 = arith.cmpi ne, %1, %c0_i32_0 : i32
    scf.if %2 {
      %cst_10 = arith.constant 0.000000e+00 : f32
      %12 = vector.broadcast %cst_10 : f32 to vector<256x384xf32>
      %c0_11 = arith.constant 0 : index
      %c0_12 = arith.constant 0 : index
      %13 = vector.load %arg7[%c0_11, %c0_12] : memref<256x384xf32, #tpu.memory_space<vmem>>, vector<256x384xf32>
      tpu.vector_store %arg7[%c0_11, %c0_12], %12 {strides = array<i32>} : memref<256x384xf32, #tpu.memory_space<vmem>>, vector<256x384xf32>,
    } else {
    }
    %c0 = arith.constant 0 : index
    %c0_1 = arith.constant 0 : index
    %3 = vector.load %arg7[%c0, %c0_1] : memref<256x384xf32, #tpu.memory_space<vmem>>, vector<256x384xf32>
    %c0_2 = arith.constant 0 : index
    %c0_3 = arith.constant 0 : index
    %4 = vector.load %arg3[%c0_2, %c0_3] : memref<256x128xbf16, #tpu.memory_space<vmem>>, vector<256x128xbf16>
    %c0_4 = arith.constant 0 : index
    %c0_5 = arith.constant 0 : index
    %5 = vector.load %arg4[%c0_4, %c0_5] : memref<128x384xbf16, #tpu.memory_space<vmem>>, vector<128x384xbf16>
    %cst = arith.constant dense<0.000000e+00> : vector<256x384xf32>
    %6 = tpu.matmul %4, %5, %cst {dimension_numbers = #tpu.dot_dimension_numbers<[1], [0], [0], [1], [0, 0, 1, 1], [], []>} : vector<256x128xbf16>, vector<128x384xbf16>, vector<256x384xf32> -> vector<256x384xf32>
    %7 = arith.addf %3, %6 : vector<256x384xf32>
    %c0_6 = arith.constant 0 : index
    %c0_7 = arith.constant 0 : index
    %8 = vector.load %arg7[%c0_6, %c0_7] : memref<256x384xf32, #tpu.memory_space<vmem>>, vector<256x384xf32>
    tpu.vector_store %arg7[%c0_6, %c0_7], %7 {strides = array<i32>} : memref<256x384xf32, #tpu.memory_space<vmem>>, vector<256x384xf32>,
    %c0_i32_8 = arith.constant 0 : i32
    %9 = arith.cmpi eq, %arg2, %c0_i32_8 : i32
    %10 = arith.extui %9 : i1 to i32
    %c0_i32_9 = arith.constant 0 : i32
    %11 = arith.cmpi ne, %10, %c0_i32_9 : i32
    scf.if %11 {
      %c0_10 = arith.constant 0 : index
      %c0_11 = arith.constant 0 : index
      %12 = vector.load %arg7[%c0_10, %c0_11] : memref<256x384xf32, #tpu.memory_space<vmem>>, vector<256x384xf32>
      %c0_12 = arith.constant 0 : index
      %c0_13 = arith.constant 0 : index
      %13 = vector.load %arg5[%c0_12, %c0_13] : memref<1x384xf32, #tpu.memory_space<vmem>>, vector<1x384xf32>
      %14 = vector.broadcast %13 : vector<1x384xf32> to vector<256x384xf32>
      %15 = arith.addf %12, %14 : vector<256x384xf32>
      %16 = arith.truncf %15 : vector<256x384xf32> to vector<256x384xbf16>
      %c0_14 = arith.constant 0 : index
      %c0_15 = arith.constant 0 : index
      %17 = vector.load %arg6[%c0_14, %c0_15] : memref<256x384xbf16, #tpu.memory_space<vmem>>, vector<256x384xbf16>
      tpu.vector_store %arg6[%c0_14, %c0_15], %16 {strides = array<i32>} : memref<256x384xbf16, #tpu.memory_space<vmem>>, vector<256x384xbf16>,
    } else {
    }
    return
  }
  func.func @transform_0(%arg0: i32, %arg1: i32, %arg2: i32) -> (i32, i32) {
    %c0_i32 = arith.constant 0 : i32
    return %arg0, %arg2 : i32, i32
  }
  func.func @transform_1(%arg0: i32, %arg1: i32, %arg2: i32) -> (i32, i32) {
    %c0_i32 = arith.constant 0 : i32
    return %arg2, %arg1 : i32, i32
  }
  func.func @transform_2(%arg0: i32, %arg1: i32, %arg2: i32) -> (i32, i32) {
    %c0_i32 = arith.constant 0 : i32
    %c0_i32_0 = arith.constant 0 : i32
    return %c0_i32, %arg1 : i32, i32
  }
  func.func @transform_3(%arg0: i32, %arg1: i32, %arg2: i32) -> (i32, i32) {
    %c0_i32 = arith.constant 0 : i32
    return %arg0, %arg1 : i32, i32
  }
}

module attributes {stable_mosaic.version = 11 : i64} {
  func.func @_nl_attn_single_kernel(%arg0: i32, %arg1: i32, %arg2: memref<1x256x128xbf16, #tpu.memory_space<vmem>>, %arg3: memref<1x128x128xbf16, #tpu.memory_space<vmem>>, %arg4: memref<1x128x128xbf16, #tpu.memory_space<vmem>>, %arg5: memref<1x256x128xbf16, #tpu.memory_space<vmem>>) attributes {dimension_semantics = [#tpu.dimension_semantics<parallel>, #tpu.dimension_semantics<parallel>], iteration_bounds = array<i64: 2, 1>, scalar_prefetch = 0 : i64, scratch_operands = 0 : i64, tpu.core_type = #tpu.core_type<tc>, window_params = [{transform_indices = @transform_0, window_bounds = array<i64: 1, 256, 128>}, {transform_indices = @transform_1, window_bounds = array<i64: 1, 128, 128>}, {transform_indices = @transform_2, window_bounds = array<i64: 1, 128, 128>}, {transform_indices = @transform_3, window_bounds = array<i64: 1, 256, 128>}]} {
    %c0 = arith.constant 0 : index
    %c0_0 = arith.constant 0 : index
    %c0_1 = arith.constant 0 : index
    %0 = vector.load %arg2[%c0, %c0_0, %c0_1] : memref<1x256x128xbf16, #tpu.memory_space<vmem>>, vector<1x256x128xbf16>
    %1 = vector.shape_cast %0 : vector<1x256x128xbf16> to vector<256x128xbf16>
    %c0_2 = arith.constant 0 : index
    %c0_3 = arith.constant 0 : index
    %c0_4 = arith.constant 0 : index
    %2 = vector.load %arg3[%c0_2, %c0_3, %c0_4] : memref<1x128x128xbf16, #tpu.memory_space<vmem>>, vector<1x128x128xbf16>
    %3 = vector.shape_cast %2 : vector<1x128x128xbf16> to vector<128x128xbf16>
    %cst = arith.constant dense<0.000000e+00> : vector<256x128xf32>
    %4 = tpu.matmul %1, %3, %cst {dimension_numbers = #tpu.dot_dimension_numbers<[1], [1], [0], [0], [0, 0, 1, 0], [], []>} : vector<256x128xbf16>, vector<128x128xbf16>, vector<256x128xf32> -> vector<256x128xf32>
    %5 = tpu.iota {dimensions = array<i32: 1>} : vector<256x128xi32>
    %c64_i32 = arith.constant 64 : i32
    %6 = vector.broadcast %c64_i32 : i32 to vector<256x128xi32>
    %7 = arith.cmpi slt, %5, %6 : vector<256x128xi32>
    %cst_5 = arith.constant -1.000000e+30 : f32
    %8 = vector.broadcast %cst_5 : f32 to vector<256x128xf32>
    %9 = arith.select %7, %4, %8 : vector<256x128xi1>, vector<256x128xf32>
    %cst_6 = arith.constant dense<0xFF800000> : vector<256xf32>
    %10 = vector.multi_reduction <maximumf>, %9, %cst_6 [1] : vector<256x128xf32> to vector<256xf32>
    %11 = vector.shape_cast %10 : vector<256xf32> to vector<256x1xf32>
    %12 = vector.broadcast %11 : vector<256x1xf32> to vector<256x128xf32>
    %13 = arith.subf %9, %12 : vector<256x128xf32>
    %14 = math.exp %13 : vector<256x128xf32>
    %cst_7 = arith.constant dense<0.000000e+00> : vector<256xf32>
    %15 = vector.multi_reduction <add>, %14, %cst_7 [1] : vector<256x128xf32> to vector<256xf32>
    %16 = vector.shape_cast %15 : vector<256xf32> to vector<256x1xf32>
    %17 = arith.truncf %14 : vector<256x128xf32> to vector<256x128xbf16>
    %c0_8 = arith.constant 0 : index
    %c0_9 = arith.constant 0 : index
    %c0_10 = arith.constant 0 : index
    %18 = vector.load %arg4[%c0_8, %c0_9, %c0_10] : memref<1x128x128xbf16, #tpu.memory_space<vmem>>, vector<1x128x128xbf16>
    %19 = vector.shape_cast %18 : vector<1x128x128xbf16> to vector<128x128xbf16>
    %cst_11 = arith.constant dense<0.000000e+00> : vector<256x128xf32>
    %20 = tpu.matmul %17, %19, %cst_11 {dimension_numbers = #tpu.dot_dimension_numbers<[1], [0], [0], [1], [0, 0, 1, 1], [], []>} : vector<256x128xbf16>, vector<128x128xbf16>, vector<256x128xf32> -> vector<256x128xf32>
    %21 = tpu.reciprocal %16 {approx = true} : vector<256x1xf32> -> vector<256x1xf32>
    %22 = vector.broadcast %21 : vector<256x1xf32> to vector<256x128xf32>
    %23 = arith.mulf %20, %22 : vector<256x128xf32>
    %24 = arith.truncf %23 : vector<256x128xf32> to vector<256x128xbf16>
    %c0_12 = arith.constant 0 : index
    %c0_13 = arith.constant 0 : index
    %c0_14 = arith.constant 0 : index
    %25 = vector.load %arg5[%c0_12, %c0_13, %c0_14] : memref<1x256x128xbf16, #tpu.memory_space<vmem>>, vector<1x256x128xbf16>
    %26 = vector.shape_cast %25 : vector<1x256x128xbf16> to vector<256x128xbf16>
    %27 = vector.shape_cast %24 : vector<256x128xbf16> to vector<1x256x128xbf16>
    tpu.vector_store %arg5[%c0_12, %c0_13, %c0_14], %27 {strides = array<i32>} : memref<1x256x128xbf16, #tpu.memory_space<vmem>>, vector<1x256x128xbf16>,
    return
  }
  func.func @transform_0(%arg0: i32, %arg1: i32) -> (i32, i32, i32) {
    %c0_i32 = arith.constant 0 : i32
    %c0_i32_0 = arith.constant 0 : i32
    return %arg0, %arg1, %c0_i32 : i32, i32, i32
  }
  func.func @transform_1(%arg0: i32, %arg1: i32) -> (i32, i32, i32) {
    %c0_i32 = arith.constant 0 : i32
    %c0_i32_0 = arith.constant 0 : i32
    %c0_i32_1 = arith.constant 0 : i32
    return %arg0, %c0_i32, %c0_i32_0 : i32, i32, i32
  }
  func.func @transform_2(%arg0: i32, %arg1: i32) -> (i32, i32, i32) {
    %c0_i32 = arith.constant 0 : i32
    %c0_i32_0 = arith.constant 0 : i32
    %c0_i32_1 = arith.constant 0 : i32
    return %arg0, %c0_i32, %c0_i32_0 : i32, i32, i32
  }
  func.func @transform_3(%arg0: i32, %arg1: i32) -> (i32, i32, i32) {
    %c0_i32 = arith.constant 0 : i32
    %c0_i32_0 = arith.constant 0 : i32
    return %arg0, %arg1, %c0_i32 : i32, i32, i32
  }
}

module attributes {stable_mosaic.version = 11 : i64} {
  func.func @_mm_bn_res_kernel(%arg0: i32, %arg1: i32, %arg2: i32, %arg3: memref<256x128xbf16, #tpu.memory_space<vmem>>, %arg4: memref<128x128xbf16, #tpu.memory_space<vmem>>, %arg5: memref<1x128xf32, #tpu.memory_space<vmem>>, %arg6: memref<1x128xf32, #tpu.memory_space<vmem>>, %arg7: memref<256x128xbf16, #tpu.memory_space<vmem>>, %arg8: memref<256x128xf32, #tpu.memory_space<vmem>>, %arg9: memref<256x128xf32, #tpu.memory_space<vmem>>) attributes {dimension_semantics = [#tpu.dimension_semantics<parallel>, #tpu.dimension_semantics<parallel>, #tpu.dimension_semantics<arbitrary>], iteration_bounds = array<i64: 2, 1, 1>, scalar_prefetch = 0 : i64, scratch_operands = 1 : i64, tpu.core_type = #tpu.core_type<tc>, window_params = [{transform_indices = @transform_0, window_bounds = array<i64: 256, 128>}, {transform_indices = @transform_1, window_bounds = array<i64: 128, 128>}, {transform_indices = @transform_2, window_bounds = array<i64: 1, 128>}, {transform_indices = @transform_3, window_bounds = array<i64: 1, 128>}, {transform_indices = @transform_4, window_bounds = array<i64: 256, 128>}, {transform_indices = @transform_5, window_bounds = array<i64: 256, 128>}]} {
    %c0_i32 = arith.constant 0 : i32
    %0 = arith.cmpi eq, %arg2, %c0_i32 : i32
    %1 = arith.extui %0 : i1 to i32
    %c0_i32_0 = arith.constant 0 : i32
    %2 = arith.cmpi ne, %1, %c0_i32_0 : i32
    scf.if %2 {
      %cst_10 = arith.constant 0.000000e+00 : f32
      %12 = vector.broadcast %cst_10 : f32 to vector<256x128xf32>
      %c0_11 = arith.constant 0 : index
      %c0_12 = arith.constant 0 : index
      %13 = vector.load %arg9[%c0_11, %c0_12] : memref<256x128xf32, #tpu.memory_space<vmem>>, vector<256x128xf32>
      tpu.vector_store %arg9[%c0_11, %c0_12], %12 {strides = array<i32>} : memref<256x128xf32, #tpu.memory_space<vmem>>, vector<256x128xf32>,
    } else {
    }
    %c0 = arith.constant 0 : index
    %c0_1 = arith.constant 0 : index
    %3 = vector.load %arg9[%c0, %c0_1] : memref<256x128xf32, #tpu.memory_space<vmem>>, vector<256x128xf32>
    %c0_2 = arith.constant 0 : index
    %c0_3 = arith.constant 0 : index
    %4 = vector.load %arg3[%c0_2, %c0_3] : memref<256x128xbf16, #tpu.memory_space<vmem>>, vector<256x128xbf16>
    %c0_4 = arith.constant 0 : index
    %c0_5 = arith.constant 0 : index
    %5 = vector.load %arg4[%c0_4, %c0_5] : memref<128x128xbf16, #tpu.memory_space<vmem>>, vector<128x128xbf16>
    %cst = arith.constant dense<0.000000e+00> : vector<256x128xf32>
    %6 = tpu.matmul %4, %5, %cst {dimension_numbers = #tpu.dot_dimension_numbers<[1], [0], [0], [1], [0, 0, 1, 1], [], []>} : vector<256x128xbf16>, vector<128x128xbf16>, vector<256x128xf32> -> vector<256x128xf32>
    %7 = arith.addf %3, %6 : vector<256x128xf32>
    %c0_6 = arith.constant 0 : index
    %c0_7 = arith.constant 0 : index
    %8 = vector.load %arg9[%c0_6, %c0_7] : memref<256x128xf32, #tpu.memory_space<vmem>>, vector<256x128xf32>
    tpu.vector_store %arg9[%c0_6, %c0_7], %7 {strides = array<i32>} : memref<256x128xf32, #tpu.memory_space<vmem>>, vector<256x128xf32>,
    %c0_i32_8 = arith.constant 0 : i32
    %9 = arith.cmpi eq, %arg2, %c0_i32_8 : i32
    %10 = arith.extui %9 : i1 to i32
    %c0_i32_9 = arith.constant 0 : i32
    %11 = arith.cmpi ne, %10, %c0_i32_9 : i32
    scf.if %11 {
      %c0_10 = arith.constant 0 : index
      %c0_11 = arith.constant 0 : index
      %12 = vector.load %arg9[%c0_10, %c0_11] : memref<256x128xf32, #tpu.memory_space<vmem>>, vector<256x128xf32>
      %c0_12 = arith.constant 0 : index
      %c0_13 = arith.constant 0 : index
      %13 = vector.load %arg5[%c0_12, %c0_13] : memref<1x128xf32, #tpu.memory_space<vmem>>, vector<1x128xf32>
      %14 = vector.broadcast %13 : vector<1x128xf32> to vector<256x128xf32>
      %15 = arith.mulf %12, %14 : vector<256x128xf32>
      %c0_14 = arith.constant 0 : index
      %c0_15 = arith.constant 0 : index
      %16 = vector.load %arg6[%c0_14, %c0_15] : memref<1x128xf32, #tpu.memory_space<vmem>>, vector<1x128xf32>
      %17 = vector.broadcast %16 : vector<1x128xf32> to vector<256x128xf32>
      %18 = arith.addf %15, %17 : vector<256x128xf32>
      %c0_16 = arith.constant 0 : index
      %c0_17 = arith.constant 0 : index
      %19 = vector.load %arg7[%c0_16, %c0_17] : memref<256x128xbf16, #tpu.memory_space<vmem>>, vector<256x128xbf16>
      %20 = arith.extf %19 : vector<256x128xbf16> to vector<256x128xf32>
      %21 = arith.addf %18, %20 : vector<256x128xf32>
      %c0_18 = arith.constant 0 : index
      %c0_19 = arith.constant 0 : index
      %22 = vector.load %arg8[%c0_18, %c0_19] : memref<256x128xf32, #tpu.memory_space<vmem>>, vector<256x128xf32>
      tpu.vector_store %arg8[%c0_18, %c0_19], %21 {strides = array<i32>} : memref<256x128xf32, #tpu.memory_space<vmem>>, vector<256x128xf32>,
    } else {
    }
    return
  }
  func.func @transform_0(%arg0: i32, %arg1: i32, %arg2: i32) -> (i32, i32) {
    %c0_i32 = arith.constant 0 : i32
    return %arg0, %arg2 : i32, i32
  }
  func.func @transform_1(%arg0: i32, %arg1: i32, %arg2: i32) -> (i32, i32) {
    %c0_i32 = arith.constant 0 : i32
    return %arg2, %arg1 : i32, i32
  }
  func.func @transform_2(%arg0: i32, %arg1: i32, %arg2: i32) -> (i32, i32) {
    %c0_i32 = arith.constant 0 : i32
    %c0_i32_0 = arith.constant 0 : i32
    return %c0_i32, %arg1 : i32, i32
  }
  func.func @transform_3(%arg0: i32, %arg1: i32, %arg2: i32) -> (i32, i32) {
    %c0_i32 = arith.constant 0 : i32
    %c0_i32_0 = arith.constant 0 : i32
    return %c0_i32, %arg1 : i32, i32
  }
  func.func @transform_4(%arg0: i32, %arg1: i32, %arg2: i32) -> (i32, i32) {
    %c0_i32 = arith.constant 0 : i32
    return %arg0, %arg1 : i32, i32
  }
  func.func @transform_5(%arg0: i32, %arg1: i32, %arg2: i32) -> (i32, i32) {
    %c0_i32 = arith.constant 0 : i32
    return %arg0, %arg1 : i32, i32
  }
}

</mosaic_0001>

<bundles_post_ra>
// kernel: non_local_block_forward.4
= control target key start
LH: loop header
LB: loop body
LE: loop exit
PB: predicated region body
PF: predicated region fallthrough
CT: control target
= control target key end

     0   :  { %s2021_s12 = smov 0   ;;  %s2023_s13 = smov 0   ;;  %s2313_s0 = inlined_call_operand.vmem [shape: bf16[2,256,128], index: 0, kind: input, shape index: {}]   ;;  %s2314_s1 = inlined_call_operand.vmem [shape: bf16[2,128,128], index: 1, kind: input, shape index: {}]   ;;  %s2315_s2 = inlined_call_operand.vmem [shape: bf16[2,128,128], index: 2, kind: input, shape index: {}]   ;;  %s2316_s3 = inlined_call_operand.vmem [shape: bf16[2,256,128], index: 3, kind: output, shape index: {}]  }
   0x1   :  { %s2025_s14 = smov 0  }
   0x2 LB: > { %s25_s15 = sadd.s32 1, %s1995_s13  ;;  %p1443_p0 = scmp.ge.s32.totalorder %s1999_s14, 1  ;;  %s1999_s14 = sphi %s2025_s14, %s13_s14   ;;  %s1995_s13 = sphi %s2023_s13, %s2318_s13   ;;  %s1991_s12 = sphi %s2021_s12, %s2317_s12  }
   0x3   : > { %p27_p1 = scmp.ge.s32.totalorder %s25_s15, 2  ;;  %p178_p2 = scmp.lt.s32.totalorder %s1999_s14, 3 }
   0x5   : > { %s2320_s15 = smov (%p27_p1, %s25_s15), 0  ;;  %p179_p3 = pnand %p1443_p0, %p178_p2 }
   0x6   : > { %p221_p4 = scmp.lt.s32.totalorder (!%p179_p3), %s1991_s12, 1 }
   0x7   : > { %182 = sbr.rel (%p179_p3) target bundleno = 702 (0x2be), region = 32 }
   0xc   : > { %s2322_s12 = smov (!%p221_p4, %s1991_s12), 1  ;;  %v604_v26 = vlaneseq }
   0xd   : > { %s1519_s16 = sshll.u32 %s2322_s12, 6  ;;  %s1518_s20 = sshll.u32 %s2322_s12, 7 }
   0xe   : > { %s234_s19 = scalar_lea.vmem %s2314_s1, %s1519_s16  ;;  %s2053_s23 = scalar_lea.vmem %s2313_s0, %s1518_s20  ;;  %v2080_v27 = vand.u32 127, %v604_v26 }
   0xf   : > { %v1817_v0 = vld [vmem:[%s234_s19 + $0x38] sm:$0xff]   ;;  %v1818_v1 = vld [vmem:[%s234_s19 + $0x30] sm:$0xff]   ;;  %v1819_v2 = vld [vmem:[%s234_s19 + $0x28] sm:$0xff]   ;;  %s2076_s26 = scalar_lea.vmem %s2315_s2, %s1519_s16  ;;  %s2286_s29 = scalar_lea.vmem %s2316_s3, %s1518_s20 }
  0x10   : > { %1697 = vmatprep.subr.bf16.mxu0 %v1817_v0  ;;  %v1825_v3 = vld [vmem:[%s2053_s23] sm:$0xff]   ;;  %v1821_v5 = vld [vmem:[%s234_s19 + $0x18] sm:$0xff]   ;;  %v1822_v6 = vld [vmem:[%s234_s19 + $0x10] sm:$0xff]   ;;  %vm606_vm0 = vcmp.lt.s32.totalorder %v2080_v27, 64 }
  0x11   : > { %1698 = vmatpush3.bf16.xpose.msra.mxu0 %v1817_v0  ;;  %1713 = vmatprep.mubr.bf16.mxu0 %v1825_v3  ;;  %v1820_v4 = vld [vmem:[%s234_s19 + $0x20] sm:$0xff]   ;;  %v1823_v7 = vld [vmem:[%s234_s19 + $0x8] sm:$0xff]   ;;  %v1827_v10 = vld [vmem:[%s2053_s23 + $0x10] sm:$0xff]  }
  0x12   : > { %1699 = vmatprep.subr.bf16.mxu0 %v1818_v1  ;;  %v1824_v8 = vld [vmem:[%s234_s19] sm:$0xff]   ;;  %v1826_v9 = vld [vmem:[%s2053_s23 + $0x8] sm:$0xff]   ;;  %v1828_v11 = vld [vmem:[%s2053_s23 + $0x18] sm:$0xff]  }
  0x13   : > { %v1829_v12 = vld [vmem:[%s2053_s23 + $0x20] sm:$0xff]   ;;  %v1830_v13 = vld [vmem:[%s2053_s23 + $0x28] sm:$0xff]   ;;  %v1831_v14 = vld [vmem:[%s2053_s23 + $0x30] sm:$0xff]  }
  0x14   : > { %v1832_v15 = vld [vmem:[%s2053_s23 + $0x38] sm:$0xff]   ;;  %v1833_v16 = vld [vmem:[%s2053_s23 + $0x40] sm:$0xff]   ;;  %v1834_v17 = vld [vmem:[%s2053_s23 + $0x48] sm:$0xff]  }
  0x15   : > { %v1835_v18 = vld [vmem:[%s2053_s23 + $0x50] sm:$0xff]   ;;  %v1836_v19 = vld [vmem:[%s2053_s23 + $0x58] sm:$0xff]   ;;  %v1837_v20 = vld [vmem:[%s2053_s23 + $0x60] sm:$0xff]  }
  0x16   : > { %v1838_v21 = vld [vmem:[%s2053_s23 + $0x68] sm:$0xff]   ;;  %v1839_v22 = vld [vmem:[%s2053_s23 + $0x70] sm:$0xff]   ;;  %v1840_v23 = vld [vmem:[%s2053_s23 + $0x78] sm:$0xff]  }
  0x17   : > { %v1841_v24 = vld [vmem:[%s2076_s26 + $0x38] sm:$0xff]   ;;  %v1842_v25 = vld [vmem:[%s2076_s26 + $0x30] sm:$0xff]   ;;  %v1843_v40 = vld [vmem:[%s2076_s26 + $0x28] sm:$0xff]  }
  0x18   : > { %1745 = vmatprep.subr.bf16.mxu1 %v1841_v24  ;;  %v1844_v45 = vld [vmem:[%s2076_s26 + $0x20] sm:$0xff]   ;;  %v1845_v50 = vld [vmem:[%s2076_s26 + $0x18] sm:$0xff]   ;;  %v1846_v56 = vld [vmem:[%s2076_s26 + $0x10] sm:$0xff]  }
  0x19   : > { %1700 = vmatpush3.bf16.xpose.msra.mxu0 %v1818_v1  ;;  %1746 = vmatpush3.bf16.msra.mxu1 %v1841_v24  ;;  %v1847_v61 = vld [vmem:[%s2076_s26 + $0x8] sm:$0xff]  }
  0x1a   : > { %1701 = vmatprep.subr.bf16.mxu0 %v1819_v2  ;;  %1747 = vmatprep.subr.bf16.mxu1 %v1842_v25 }
  0x1d   : > { %1748 = vmatpush3.bf16.msra.mxu1 %v1842_v25 }
  0x1e   : > { %1749 = vmatprep.subr.bf16.mxu1 %v1843_v40 }
  0x21   : > { %1702 = vmatpush3.bf16.xpose.msra.mxu0 %v1819_v2  ;;  %1750 = vmatpush3.bf16.msra.mxu1 %v1843_v40  ;;  %v1848_v2 = vld [vmem:[%s2076_s26] sm:$0xff]  }
  0x22   : > { %1703 = vmatprep.subr.bf16.mxu0 %v1820_v4  ;;  %1751 = vmatprep.subr.bf16.mxu1 %v1844_v45 }
  0x25   : > { %1752 = vmatpush3.bf16.msra.mxu1 %v1844_v45 }
  0x26   : > { %1753 = vmatprep.subr.bf16.mxu1 %v1845_v50 }
  0x29   : > { %1704 = vmatpush3.bf16.xpose.msra.mxu0 %v1820_v4  ;;  %1754 = vmatpush3.bf16.msra.mxu1 %v1845_v50 }
  0x2a   : > { %1705 = vmatprep.subr.bf16.mxu0 %v1821_v5  ;;  %1755 = vmatprep.subr.bf16.mxu1 %v1846_v56 }
  0x2d   : > { %1756 = vmatpush3.bf16.msra.mxu1 %v1846_v56 }
  0x2e   : > { %1757 = vmatprep.subr.bf16.mxu1 %v1847_v61 }
  0x31   : > { %1706 = vmatpush3.bf16.xpose.msra.mxu0 %v1821_v5  ;;  %1758 = vmatpush3.bf16.msra.mxu1 %v1847_v61 }
  0x32   : > { %1707 = vmatprep.subr.bf16.mxu0 %v1822_v6  ;;  %1759 = vmatprep.subr.bf16.mxu1 %v1848_v2 }
  0x35   : > { %1760 = vmatpush3.bf16.msra.mxu1 %v1848_v2 }
  0x39   : > { %1708 = vmatpush3.bf16.xpose.msra.mxu0 %v1822_v6 }
  0x3a   : > { %1709 = vmatprep.subr.bf16.mxu0 %v1823_v7 }
  0x41   : > { %1710 = vmatpush3.bf16.xpose.msra.mxu0 %v1823_v7 }
  0x42   : > { %1711 = vmatprep.subr.bf16.mxu0 %v1824_v8 }
  0x49   : > { %1712 = vmatpush3.bf16.xpose.msra.mxu0 %v1824_v8 }
  0x50   : > { %1714 = vmatmul.mubr.bf16.vlgmr.msra.gmra.mxu0 %v1826_v9 }
  0x51   : > { %1717 = vmatprep.mubr.bf16.mxu0 %v1827_v10 }
  0x58   : > { %1718 = vmatmul.mubr.bf16.gmra.mxu0 %v1828_v11 }
  0x59   : > { %1721 = vmatprep.mubr.bf16.mxu0 %v1829_v12 }
  0x60   : > { %1722 = vmatmul.mubr.bf16.gmra.mxu0 %v1830_v13 }
  0x61   : > { %1725 = vmatprep.mubr.bf16.mxu0 %v1831_v14 }
  0x68   : > { %1726 = vmatmul.mubr.bf16.gmra.mxu0 %v1832_v15 }
  0x69   : > { %1729 = vmatprep.mubr.bf16.mxu0 %v1833_v16 }
  0x70   : > { %1730 = vmatmul.mubr.bf16.gmra.mxu0 %v1834_v17 }
  0x71   : > { %1733 = vmatprep.mubr.bf16.mxu0 %v1835_v18 }
  0x78   : > { %1734 = vmatmul.mubr.bf16.gmra.mxu0 %v1836_v19 }
  0x79   : > { %1737 = vmatprep.mubr.bf16.mxu0 %v1837_v20 }
  0x80   : > { %1738 = vmatmul.mubr.bf16.gmra.mxu0 %v1838_v21 }
  0x81   : > { %1741 = vmatprep.mubr.bf16.mxu0 %v1839_v22 }
  0x88   : > { %1742 = vmatmul.mubr.bf16.gmra.mxu0 %v1840_v23 }
 0x110   : > { %v1715_v28 = vpop.f32.mrf.mxu0 }
 0x111   : > { %v2085_v29 = vsel %vm606_vm0, %v1715_v28, -1e+30 }
 0x112   : > { %643 = vmax.xlane.f32.xlu1 %v2085_v29  ;;  %v477_v30 = vpop.f32.mrf.mxu0 }
 0x113   : > { %v2090_v31 = vsel %vm606_vm0, %v477_v30, -1e+30 }
 0x114   : > { %639 = vmax.xlane.f32.xlu0 %v2090_v31  ;;  %v1716_v32 = vpop.f32.mrf.mxu0 }
 0x115   : > { %v2095_v33 = vsel %vm606_vm0, %v1716_v32, -1e+30 }
 0x116   : > { %645 = vmax.xlane.f32.xlu1 %v2095_v33  ;;  %v480_v34 = vpop.f32.mrf.mxu0 }
 0x117   : > { %v2100_v35 = vsel %vm606_vm0, %v480_v34, -1e+30 }
 0x118   : > { %641 = vmax.xlane.f32.xlu0 %v2100_v35  ;;  %v1719_v36 = vpop.f32.mrf.mxu0 }
 0x119   : > { %v2111_v42 = vsel %vm606_vm0, %v1719_v36, -1e+30 }
 0x11a   : > { %v493_v37 = vpop.f32.mrf.mxu0 }
 0x11b   : > { %v2105_v38 = vsel %vm606_vm0, %v493_v37, -1e+30 }
 0x11c   : > { %647 = vmax.xlane.f32.xlu0 %v2105_v38  ;;  %v1720_v39 = vpop.f32.mrf.mxu0 }
 0x11d   : > { %v2122_v47 = vsel %vm606_vm0, %v1720_v39, -1e+30 }
 0x11e   : > { %v496_v41 = vpop.f32.mrf.mxu0 }
 0x11f   : > { %v2115_v43 = vsel %vm606_vm0, %v496_v41, -1e+30 }
 0x120   : > { %651 = vmax.xlane.f32.xlu0 %v2111_v42  ;;  %649 = vmax.xlane.f32.xlu1 %v2115_v43  ;;  %v1723_v44 = vpop.f32.mrf.mxu0 }
 0x121   : > { %v2133_v52 = vsel %vm606_vm0, %v1723_v44, -1e+30 }
 0x122   : > { %v509_v46 = vpop.f32.mrf.mxu0 }
 0x123   : > { %v2126_v48 = vsel %vm606_vm0, %v509_v46, -1e+30 }
 0x124   : > { %653 = vmax.xlane.f32.xlu1 %v2122_v47  ;;  %655 = vmax.xlane.f32.xlu0 %v2126_v48  ;;  %v1724_v49 = vpop.f32.mrf.mxu0 }
 0x125   : > { %v2144_v57 = vsel %vm606_vm0, %v1724_v49, -1e+30 }
 0x126   : > { %v512_v51 = vpop.f32.mrf.mxu0 }
 0x127   : > { %v2137_v53 = vsel %vm606_vm0, %v512_v51, -1e+30 }
 0x128   : > { %659 = vmax.xlane.f32.xlu0 %v2133_v52  ;;  %657 = vmax.xlane.f32.xlu1 %v2137_v53  ;;  %v1727_v54 = vpop.f32.mrf.mxu0 }
 0x129   : > { %v2155_v62 = vsel %vm606_vm0, %v1727_v54, -1e+30 }
 0x12a   : > { %v525_v55 = vpop.f32.mrf.mxu0 }
 0x12b   : > { %v2148_v58 = vsel %vm606_vm0, %v525_v55, -1e+30 }
 0x12c   : > { %661 = vmax.xlane.f32.xlu1 %v2144_v57  ;;  %663 = vmax.xlane.f32.xlu0 %v2148_v58  ;;  %v1728_v59 = vpop.f32.mrf.mxu0 }
 0x12d   : > { %v2166_v3 = vsel %vm606_vm0, %v1728_v59, -1e+30 }
 0x12e   : > { %v528_v60 = vpop.f32.mrf.mxu0 }
 0x12f   : > { %v2159_v63 = vsel %vm606_vm0, %v528_v60, -1e+30 }
 0x130   : > { %667 = vmax.xlane.f32.xlu0 %v2155_v62  ;;  %665 = vmax.xlane.f32.xlu1 %v2159_v63  ;;  %v1731_v0 = vpop.f32.mrf.mxu0 }
 0x131   : > { %v2176_v7 = vsel %vm606_vm0, %v1731_v0, -1e+30 }
 0x132   : > { %v541_v1 = vpop.f32.mrf.mxu0 }
 0x133   : > { %v2170_v4 = vsel %vm606_vm0, %v541_v1, -1e+30 }
 0x134   : > { %669 = vmax.xlane.f32.xlu1 %v2166_v3  ;;  %671 = vmax.xlane.f32.xlu0 %v2170_v4  ;;  %v1732_v5 = vpop.f32.mrf.mxu0 }
 0x135   : > { %v2186_v11 = vsel %vm606_vm0, %v1732_v5, -1e+30 }
 0x136   : > { %v544_v6 = vpop.f32.mrf.mxu0 }
 0x137   : > { %v2180_v8 = vsel %vm606_vm0, %v544_v6, -1e+30 }
 0x138   : > { %675 = vmax.xlane.f32.xlu0 %v2176_v7  ;;  %673 = vmax.xlane.f32.xlu1 %v2180_v8  ;;  %v1735_v9 = vpop.f32.mrf.mxu0 }
 0x139   : > { %v2196_v15 = vsel %vm606_vm0, %v1735_v9, -1e+30 }
 0x13a   : > { %v557_v10 = vpop.f32.mrf.mxu0 }
 0x13b   : > { %v2190_v12 = vsel %vm606_vm0, %v557_v10, -1e+30 }
 0x13c   : > { %677 = vmax.xlane.f32.xlu1 %v2186_v11  ;;  %679 = vmax.xlane.f32.xlu0 %v2190_v12  ;;  %v1736_v13 = vpop.f32.mrf.mxu0 }
 0x13d   : > { %v2206_v19 = vsel %vm606_vm0, %v1736_v13, -1e+30 }
 0x13e   : > { %v560_v14 = vpop.f32.mrf.mxu0 }
 0x13f   : > { %v2200_v16 = vsel %vm606_vm0, %v560_v14, -1e+30 }
 0x140   : > { %683 = vmax.xlane.f32.xlu0 %v2196_v15  ;;  %681 = vmax.xlane.f32.xlu1 %v2200_v16  ;;  %v1739_v17 = vpop.f32.mrf.mxu0 }
 0x141   : > { %v2216_v23 = vsel %vm606_vm0, %v1739_v17, -1e+30 }
 0x142   : > { %v573_v18 = vpop.f32.mrf.mxu0 }
 0x143   : > { %v2210_v20 = vsel %vm606_vm0, %v573_v18, -1e+30 }
 0x144   : > { %685 = vmax.xlane.f32.xlu1 %v2206_v19  ;;  %687 = vmax.xlane.f32.xlu0 %v2210_v20  ;;  %v1740_v21 = vpop.f32.mrf.mxu0 }
 0x145   : > { %v2226_v28 = vsel %vm606_vm0, %v1740_v21, -1e+30 }
 0x146   : > { %v576_v22 = vpop.f32.mrf.mxu0 }
 0x147   : > { %v2220_v24 = vsel %vm606_vm0, %v576_v22, -1e+30 }
 0x148   : > { %691 = vmax.xlane.f32.xlu0 %v2216_v23  ;;  %689 = vmax.xlane.f32.xlu1 %v2220_v24  ;;  %v1743_v25 = vpop.f32.mrf.mxu0 }
 0x149   : > { %v2236_v36 = vsel %vm606_vm0, %v1743_v25, -1e+30 }
 0x14a   : > { %v589_v26 = vpop.f32.mrf.mxu0 }
 0x14b   : > { %v2230_v30 = vsel %vm606_vm0, %v589_v26, -1e+30 }
 0x14c   : > { %693 = vmax.xlane.f32.xlu1 %v2226_v28  ;;  %695 = vmax.xlane.f32.xlu0 %v2230_v30  ;;  %v1744_v32 = vpop.f32.mrf.mxu0 }
 0x14d   : > { %v2246_v39 = vsel %vm606_vm0, %v1744_v32, -1e+30 }
 0x14e   : > { %v592_v34 = vpop.f32.mrf.mxu0 }
 0x14f   : > { %v2240_v37 = vsel %vm606_vm0, %v592_v34, -1e+30 }
 0x150   : > { %699 = vmax.xlane.f32.xlu0 %v2236_v36  ;;  %697 = vmax.xlane.f32.xlu1 %v2240_v37 }
 0x154   : > { %701 = vmax.xlane.f32.xlu1 %v2246_v39 }
 0x19b   : > { %v644_v40 = vpop.xlane.xlu1 %643 }
 0x19c   : > { %v705_v41 = vsub.f32 %v2085_v29, %v644_v40 }
 0x19d   : > { %v640_v44 = vpop.xlane.xlu0 %639 }
 0x19e   : > { %v739_v45 = vmul.f32 1.442695, %v705_v41  ;;  %v703_v46 = vsub.f32 %v2090_v31, %v640_v44 }
 0x19f   : > { %v646_v49 = vpop.xlane.xlu1 %645 }
 0x1a0   : > { %1849 = vpow2.f32 %v739_v45  ;;  %v735_v50 = vmul.f32 1.442695, %v703_v46  ;;  %v706_v51 = vsub.f32 %v2095_v33, %v646_v49 }
 0x1a1   : > { %v642_v54 = vpop.xlane.xlu0 %641 }
 0x1a2   : > { %v741_v55 = vmul.f32 1.442695, %v706_v51  ;;  %v704_v27 = vsub.f32 %v2100_v35, %v642_v54  ;;  %1851 = vpow2.f32 %v735_v50 }
 0x1a4   : > { %1853 = vpow2.f32 %v741_v55  ;;  %v737_v56 = vmul.f32 1.442695, %v704_v27 }
 0x1a5   : > { %v648_v59 = vpop.xlane.xlu0 %647 }
 0x1a6   : > { %1855 = vpow2.f32 %v737_v56  ;;  %v707_v29 = vsub.f32 %v2105_v38, %v648_v59 }
 0x1a8   : > { %v743_v60 = vmul.f32 1.442695, %v707_v29 }
 0x1a9   : > { %v652_v61 = vpop.xlane.xlu0 %651  ;;  %v650_v0 = vpop.xlane.xlu1 %649 }
 0x1aa   : > { %v709_v31 = vsub.f32 %v2111_v42, %v652_v61  ;;  %v708_v1 = vsub.f32 %v2115_v43, %v650_v0  ;;  %1857 = vpow2.f32 %v743_v60 }
 0x1ac   : > { %v747_v2 = vmul.f32 1.442695, %v709_v31  ;;  %v745_v33 = vmul.f32 1.442695, %v708_v1 }
 0x1ad   : > { %v1850_v5 = vpop.eup %1849  ;;  %v654_v6 = vpop.xlane.xlu1 %653 }
 0x1ae   : > { %v656_v35 = vpop.xlane.xlu0 %655  ;;  %1859 = vpow2.f32 %v747_v2  ;;  %v710_v9 = vsub.f32 %v2122_v47, %v654_v6  ;;  %803 = vadd.xlane.f32.xlu0 %v1850_v5 }
 0x1af   : > { %v711_v10 = vsub.f32 %v2126_v48, %v656_v35  ;;  %1861 = vpow2.f32 %v745_v33  ;;  %v1852_v38 = vpop.eup %1851 }
 0x1b0   : > { %v749_v13 = vmul.f32 1.442695, %v710_v9 }
 0x1b1   : > { %v1854_v14 = vpop.eup %1853  ;;  %v751_v17 = vmul.f32 1.442695, %v711_v10  ;;  %v658_v18 = vpop.xlane.xlu1 %657 }
 0x1b2   : > { %v660_v42 = vpop.xlane.xlu0 %659  ;;  %1863 = vpow2.f32 %v749_v13  ;;  %v712_v21 = vsub.f32 %v2137_v53, %v658_v18  ;;  %799 = vadd.xlane.f32.xlu0 %v1852_v38  ;;  %805 = vadd.xlane.f32.xlu1 %v1854_v14  ;;  %v864_v34 = vpack.c.bf16 %v1854_v14, %v1850_v5 }
 0x1b3   : > { %v713_v43 = vsub.f32 %v2133_v52, %v660_v42  ;;  %v1856_v22 = vpop.eup %1855  ;;  %1865 = vpow2.f32 %v751_v17 }
 0x1b4   : > { %v753_v47 = vmul.f32 1.442695, %v712_v21  ;;  %v863_v26 = vpack.c.bf16 %v1856_v22, %v1852_v38 }
 0x1b5   : > { %v755_v25 = vmul.f32 1.442695, %v713_v43  ;;  %v662_v48 = vpop.xlane.xlu1 %661 }
 0x1b6   : > { %v664_v32 = vpop.xlane.xlu0 %663  ;;  %v714_v40 = vsub.f32 %v2144_v57, %v662_v48  ;;  %1761 = vmatprep.mubr.bf16.mxu1 %v863_v26  ;;  %801 = vadd.xlane.f32.xlu1 %v1856_v22 }
 0x1b7   : > { %1867 = vpow2.f32 %v755_v25  ;;  %v715_v41 = vsub.f32 %v2148_v58, %v664_v32  ;;  %1762 = vmatmul.mubr.bf16.vlgmr.msra.gmra.mxu1 %v864_v34  ;;  %v1858_v46 = vpop.eup %1857 }
 0x1b8   : > { %1869 = vpow2.f32 %v753_v47  ;;  %v757_v52 = vmul.f32 1.442695, %v714_v40 }
 0x1b9   : > { %v759_v53 = vmul.f32 1.442695, %v715_v41  ;;  %v666_v45 = vpop.xlane.xlu1 %665 }
 0x1ba   : > { %v668_v44 = vpop.xlane.xlu0 %667  ;;  %1871 = vpow2.f32 %v757_v52  ;;  %v716_v50 = vsub.f32 %v2159_v63, %v666_v45 }
 0x1bb   : > { %v717_v49 = vsub.f32 %v2155_v62, %v668_v44  ;;  %v1860_v51 = vpop.eup %1859  ;;  %1873 = vpow2.f32 %v759_v53 }
 0x1bc   : > { %v1862_v54 = vpop.eup %1861  ;;  %v761_v57 = vmul.f32 1.442695, %v716_v50  ;;  %811 = vadd.xlane.f32.xlu0 %v1860_v51 }
 0x1bd   : > { %v763_v55 = vmul.f32 1.442695, %v717_v49  ;;  %v670_v58 = vpop.xlane.xlu1 %669  ;;  %v865_v56 = vpack.c.bf16 %v1862_v54, %v1858_v46 }
 0x1be   : > { %v672_v27 = vpop.xlane.xlu0 %671  ;;  %v718_v59 = vsub.f32 %v2166_v3, %v670_v58 }
 0x1bf   : > { %1875 = vpow2.f32 %v763_v55  ;;  %v719_v29 = vsub.f32 %v2170_v4, %v672_v27  ;;  %v1864_v60 = vpop.eup %1863  ;;  %1765 = vmatprep.mubr.bf16.mxu1 %v865_v56 }
 0x1c0   : > { %1877 = vpow2.f32 %v761_v57  ;;  %v765_v62 = vmul.f32 1.442695, %v718_v59  ;;  %807 = vadd.xlane.f32.xlu0 %v1858_v46  ;;  %813 = vadd.xlane.f32.xlu1 %v1864_v60  ;;  %v866_v63 = vpack.c.bf16 %v1864_v60, %v1860_v51  ;;  %v1866_v1 = vpop.eup %1865 }
 0x1c1   : > { %v767_v61 = vmul.f32 1.442695, %v719_v29  ;;  %v674_v31 = vpop.xlane.xlu1 %673 }
 0x1c2   : > { %v676_v0 = vpop.xlane.xlu0 %675  ;;  %1879 = vpow2.f32 %v765_v62  ;;  %v720_v33 = vsub.f32 %v2180_v8, %v674_v31  ;;  %1766 = vmatmul.mubr.bf16.gmra.mxu1 %v866_v63 }
 0x1c3   : > { %v721_v2 = vsub.f32 %v2176_v7, %v676_v0  ;;  %1881 = vpow2.f32 %v767_v61 }
 0x1c4   : > { %v1868_v3 = vpop.eup %1867  ;;  %v769_v6 = vmul.f32 1.442695, %v720_v33  ;;  %809 = vadd.xlane.f32.xlu1 %v1862_v54 }
 0x1c5   : > { %v1870_v5 = vpop.eup %1869  ;;  %v771_v4 = vmul.f32 1.442695, %v721_v2  ;;  %819 = vadd.xlane.f32.xlu0 %v1868_v3  ;;  %v678_v35 = vpop.xlane.xlu1 %677 }
 0x1c6   : > { %v680_v9 = vpop.xlane.xlu0 %679  ;;  %v867_v10 = vpack.c.bf16 %v1870_v5, %v1866_v1  ;;  %v722_v38 = vsub.f32 %v2186_v11, %v678_v35 }
 0x1c7   : > { %1883 = vpow2.f32 %v771_v4  ;;  %v723_v13 = vsub.f32 %v2190_v12, %v680_v9  ;;  %v1872_v14 = vpop.eup %1871 }
 0x1c8   : > { %1885 = vpow2.f32 %v769_v6  ;;  %1769 = vmatprep.mubr.bf16.mxu1 %v867_v10  ;;  %v773_v7 = vmul.f32 1.442695, %v722_v38  ;;  %821 = vadd.xlane.f32.xlu1 %v1872_v14  ;;  %v868_v8 = vpack.c.bf16 %v1872_v14, %v1868_v3  ;;  %v1874_v43 = vpop.eup %1873 }
 0x1c9   : > { %815 = vadd.xlane.f32.xlu0 %v1866_v1  ;;  %v775_v17 = vmul.f32 1.442695, %v723_v13  ;;  %v682_v18 = vpop.xlane.xlu1 %681 }
 0x1ca   : > { %v684_v42 = vpop.xlane.xlu0 %683  ;;  %1887 = vpow2.f32 %v773_v7  ;;  %v724_v22 = vsub.f32 %v2200_v16, %v682_v18  ;;  %1770 = vmatmul.mubr.bf16.gmra.mxu1 %v868_v8 }
 0x1cb   : > { %v725_v21 = vsub.f32 %v2196_v15, %v684_v42  ;;  %1889 = vpow2.f32 %v775_v17 }
 0x1cc   : > { %v1876_v11 = vpop.eup %1875  ;;  %v777_v47 = vmul.f32 1.442695, %v724_v22  ;;  %817 = vadd.xlane.f32.xlu1 %v1870_v5 }
 0x1cd   : > { %v1878_v25 = vpop.eup %1877  ;;  %v779_v12 = vmul.f32 1.442695, %v725_v21  ;;  %827 = vadd.xlane.f32.xlu0 %v1876_v11  ;;  %v686_v26 = vpop.xlane.xlu1 %685 }
 0x1ce   : > { %v688_v48 = vpop.xlane.xlu0 %687  ;;  %v869_v32 = vpack.c.bf16 %v1878_v25, %v1874_v43  ;;  %v726_v34 = vsub.f32 %v2206_v19, %v686_v26 }
 0x1cf   : > { %1891 = vpow2.f32 %v779_v12  ;;  %v727_v40 = vsub.f32 %v2210_v20, %v688_v48  ;;  %v1880_v41 = vpop.eup %1879 }
 0x1d0   : > { %1893 = vpow2.f32 %v777_v47  ;;  %1773 = vmatprep.mubr.bf16.mxu1 %v869_v32  ;;  %v781_v15 = vmul.f32 1.442695, %v726_v34  ;;  %829 = vadd.xlane.f32.xlu1 %v1880_v41  ;;  %v870_v16 = vpack.c.bf16 %v1880_v41, %v1876_v11  ;;  %v1882_v45 = vpop.eup %1881 }
 0x1d1   : > { %823 = vadd.xlane.f32.xlu0 %v1874_v43  ;;  %v783_v52 = vmul.f32 1.442695, %v727_v40  ;;  %v690_v44 = vpop.xlane.xlu1 %689 }
 0x1d2   : > { %v692_v53 = vpop.xlane.xlu0 %691  ;;  %1895 = vpow2.f32 %v781_v15  ;;  %v728_v49 = vsub.f32 %v2220_v24, %v690_v44  ;;  %1774 = vmatmul.mubr.bf16.gmra.mxu1 %v870_v16 }
 0x1d3   : > { %v729_v46 = vsub.f32 %v2216_v23, %v692_v53  ;;  %1897 = vpow2.f32 %v783_v52 }
 0x1d4   : > { %v1884_v19 = vpop.eup %1883  ;;  %v785_v51 = vmul.f32 1.442695, %v728_v49  ;;  %825 = vadd.xlane.f32.xlu1 %v1878_v25 }
 0x1d5   : > { %v1886_v50 = vpop.eup %1885  ;;  %v787_v20 = vmul.f32 1.442695, %v729_v46  ;;  %835 = vadd.xlane.f32.xlu0 %v1884_v19  ;;  %v694_v54 = vpop.xlane.xlu1 %693 }
 0x1d6   : > { %v696_v55 = vpop.xlane.xlu0 %695  ;;  %v871_v57 = vpack.c.bf16 %v1886_v50, %v1882_v45  ;;  %v730_v58 = vsub.f32 %v2226_v28, %v694_v54 }
 0x1d7   : > { %1899 = vpow2.f32 %v787_v20  ;;  %v731_v27 = vsub.f32 %v2230_v30, %v696_v55  ;;  %v1888_v56 = vpop.eup %1887 }
 0x1d8   : > { %1901 = vpow2.f32 %v785_v51  ;;  %1777 = vmatprep.mubr.bf16.mxu1 %v871_v57  ;;  %v789_v23 = vmul.f32 1.442695, %v730_v58  ;;  %837 = vadd.xlane.f32.xlu1 %v1888_v56  ;;  %v872_v24 = vpack.c.bf16 %v1888_v56, %v1884_v19  ;;  %v1890_v60 = vpop.eup %1889 }
 0x1d9   : > { %831 = vadd.xlane.f32.xlu0 %v1882_v45  ;;  %v698_v29 = vpop.xlane.xlu1 %697  ;;  %v791_v62 = vmul.f32 1.442695, %v731_v27 }
 0x1da   : > { %v700_v59 = vpop.xlane.xlu0 %699  ;;  %1903 = vpow2.f32 %v789_v23  ;;  %v732_v61 = vsub.f32 %v2240_v37, %v698_v29  ;;  %1778 = vmatmul.mubr.bf16.gmra.mxu1 %v872_v24 }
 0x1db   : > { %v733_v63 = vsub.f32 %v2236_v36, %v700_v59  ;;  %1905 = vpow2.f32 %v791_v62 }
 0x1dc   : > { %v1892_v28 = vpop.eup %1891  ;;  %v793_v30 = vmul.f32 1.442695, %v732_v61  ;;  %833 = vadd.xlane.f32.xlu1 %v1886_v50 }
 0x1dd   : > { %v1894_v0 = vpop.eup %1893  ;;  %843 = vadd.xlane.f32.xlu0 %v1892_v28  ;;  %v795_v31 = vmul.f32 1.442695, %v733_v63  ;;  %v702_v1 = vpop.xlane.xlu1 %701 }
 0x1de   : > { %v873_v2 = vpack.c.bf16 %v1894_v0, %v1890_v60  ;;  %v734_v33 = vsub.f32 %v2246_v39, %v702_v1  ;;  %1907 = vpow2.f32 %v793_v30 }
 0x1df   : > { %v1896_v3 = vpop.eup %1895  ;;  %1909 = vpow2.f32 %v795_v31 }
 0x1e0   : > { %1781 = vmatprep.mubr.bf16.mxu1 %v873_v2  ;;  %v797_v5 = vmul.f32 1.442695, %v734_v33  ;;  %845 = vadd.xlane.f32.xlu1 %v1896_v3  ;;  %v874_v36 = vpack.c.bf16 %v1896_v3, %v1892_v28  ;;  %v1898_v37 = vpop.eup %1897 }
 0x1e1   : > { %839 = vadd.xlane.f32.xlu0 %v1890_v60 }
 0x1e2   : > { %1911 = vpow2.f32 %v797_v5  ;;  %1782 = vmatmul.mubr.bf16.gmra.mxu1 %v874_v36 }
 0x1e4   : > { %v1900_v4 = vpop.eup %1899  ;;  %841 = vadd.xlane.f32.xlu1 %v1894_v0 }
 0x1e5   : > { %v1902_v6 = vpop.eup %1901  ;;  %851 = vadd.xlane.f32.xlu0 %v1900_v4 }
 0x1e6   : > { %v875_v35 = vpack.c.bf16 %v1902_v6, %v1898_v37 }
 0x1e7   : > { %v1904_v9 = vpop.eup %1903 }
 0x1e8   : > { %1785 = vmatprep.mubr.bf16.mxu1 %v875_v35  ;;  %853 = vadd.xlane.f32.xlu1 %v1904_v9  ;;  %v876_v39 = vpack.c.bf16 %v1904_v9, %v1900_v4  ;;  %v1906_v10 = vpop.eup %1905 }
 0x1e9   : > { %847 = vadd.xlane.f32.xlu0 %v1898_v37 }
 0x1ea   : > { %1786 = vmatmul.mubr.bf16.gmra.mxu1 %v876_v39 }
 0x1eb   : > { %v1908_v38 = vpop.eup %1907 }
 0x1ec   : > { %849 = vadd.xlane.f32.xlu1 %v1902_v6  ;;  %v877_v13 = vpack.c.bf16 %v1908_v38, %v1906_v10  ;;  %v1910_v14 = vpop.eup %1909 }
 0x1ed   : > { %855 = vadd.xlane.f32.xlu0 %v1906_v10 }
 0x1ee   : > { %1789 = vmatprep.mubr.bf16.mxu1 %v877_v13 }
 0x1ef   : > { %v1912_v7 = vpop.eup %1911 }
 0x1f0   : > { %857 = vadd.xlane.f32.xlu1 %v1908_v38  ;;  %v878_v8 = vpack.c.bf16 %v1912_v7, %v1910_v14 }
 0x1f1   : > { %859 = vadd.xlane.f32.xlu0 %v1910_v14 }
 0x1f2   : > { %1790 = vmatmul.mubr.bf16.gmra.mxu1 %v878_v8 }
 0x1f4   : > { %861 = vadd.xlane.f32.xlu1 %v1912_v7 }
 0x237   : > { %v804_v17 = vpop.xlane.xlu0 %803 }
 0x238   : > { %1913 = vrcp.f32 %v804_v17 }
 0x23b   : > { %v806_v42 = vpop.xlane.xlu1 %805  ;;  %v800_v18 = vpop.xlane.xlu0 %799 }
 0x23c   : > { %1915 = vrcp.f32 %v806_v42 }
 0x23d   : > { %1917 = vrcp.f32 %v800_v18 }
 0x23f   : > { %v802_v43 = vpop.xlane.xlu1 %801 }
 0x240   : > { %1919 = vrcp.f32 %v802_v43 }
 0x245   : > { %v812_v21 = vpop.xlane.xlu0 %811  ;;  %v1914_v52 = vpop.eup %1913 }
 0x246   : > { %1921 = vrcp.f32 %v812_v21 }
 0x249   : > { %v814_v22 = vpop.xlane.xlu1 %813  ;;  %v808_v11 = vpop.xlane.xlu0 %807 }
 0x24a   : > { %1923 = vrcp.f32 %v814_v22  ;;  %v1916_v53 = vpop.eup %1915 }
 0x24b   : > { %1925 = vrcp.f32 %v808_v11  ;;  %v1918_v46 = vpop.eup %1917 }
 0x24d   : > { %v810_v25 = vpop.xlane.xlu1 %809  ;;  %v1920_v20 = vpop.eup %1919 }
 0x24e   : > { %v820_v12 = vpop.xlane.xlu0 %819  ;;  %1927 = vrcp.f32 %v810_v25 }
 0x24f   : > { %1929 = vrcp.f32 %v820_v12 }
 0x251   : > { %v822_v47 = vpop.xlane.xlu1 %821 }
 0x252   : > { %v816_v26 = vpop.xlane.xlu0 %815  ;;  %1931 = vrcp.f32 %v822_v47 }
 0x253   : > { %1933 = vrcp.f32 %v816_v26  ;;  %v1922_v59 = vpop.eup %1921 }
 0x255   : > { %v818_v48 = vpop.xlane.xlu1 %817 }
 0x256   : > { %v828_v32 = vpop.xlane.xlu0 %827  ;;  %1935 = vrcp.f32 %v818_v48 }
 0x257   : > { %v1924_v29 = vpop.eup %1923  ;;  %1937 = vrcp.f32 %v828_v32 }
 0x258   : > { %v1926_v62 = vpop.eup %1925 }
 0x259   : > { %v830_v34 = vpop.xlane.xlu1 %829 }
 0x25a   : > { %v824_v40 = vpop.xlane.xlu0 %823  ;;  %1939 = vrcp.f32 %v830_v34 }
 0x25b   : > { %v1928_v0 = vpop.eup %1927  ;;  %1941 = vrcp.f32 %v824_v40 }
 0x25c   : > { %v1930_v37 = vpop.eup %1929 }
 0x25d   : > { %v826_v41 = vpop.xlane.xlu1 %825 }
 0x25e   : > { %v836_v44 = vpop.xlane.xlu0 %835  ;;  %1943 = vrcp.f32 %v826_v41 }
 0x25f   : > { %v1932_v6 = vpop.eup %1931  ;;  %1945 = vrcp.f32 %v836_v44 }
 0x260   : > { %v1934_v39 = vpop.eup %1933 }
 0x261   : > { %v838_v49 = vpop.xlane.xlu1 %837 }
 0x262   : > { %v832_v27 = vpop.xlane.xlu0 %831  ;;  %1947 = vrcp.f32 %v838_v49 }
 0x263   : > { %v1936_v13 = vpop.eup %1935  ;;  %1949 = vrcp.f32 %v832_v27 }
 0x264   : > { %v1938_v11 = vpop.eup %1937 }
 0x265   : > { %v834_v56 = vpop.xlane.xlu1 %833 }
 0x266   : > { %v844_v63 = vpop.xlane.xlu0 %843  ;;  %1951 = vrcp.f32 %v834_v56 }
 0x267   : > { %v1940_v25 = vpop.eup %1939  ;;  %1953 = vrcp.f32 %v844_v63 }
 0x268   : > { %v1942_v47 = vpop.eup %1941 }
 0x269   : > { %v846_v30 = vpop.xlane.xlu1 %845 }
 0x26a   : > { %v840_v4 = vpop.xlane.xlu0 %839  ;;  %1955 = vrcp.f32 %v846_v30 }
 0x26b   : > { %v1944_v32 = vpop.eup %1943  ;;  %1957 = vrcp.f32 %v840_v4 }
 0x26d   : > { %v842_v35 = vpop.xlane.xlu1 %841 }
 0x26e   : > { %v852_v18 = vpop.xlane.xlu0 %851  ;;  %1959 = vrcp.f32 %v842_v35 }
 0x26f   : > { %1961 = vrcp.f32 %v852_v18 }
 0x271   : > { %v854_v21 = vpop.xlane.xlu1 %853 }
 0x272   : > { %v848_v40 = vpop.xlane.xlu0 %847  ;;  %1963 = vrcp.f32 %v854_v21 }
 0x273   : > { %1965 = vrcp.f32 %v848_v40 }
 0x277   : > { %v1763_v15 = vpop.f32.mrf.mxu1 }
 0x278   : > { %v1138_v19 = vmul.f32 %v1914_v52, %v1763_v15  ;;  %v850_v52 = vpop.xlane.xlu1 %849 }
 0x279   : > { %v977_v16 = vpop.f32.mrf.mxu1  ;;  %1967 = vrcp.f32 %v850_v52 }
 0x27a   : > { %v1136_v54 = vmul.f32 %v1918_v46, %v977_v16  ;;  %v1946_v46 = vpop.eup %1945 }
 0x27b   : > { %v1764_v45 = vpop.f32.mrf.mxu1  ;;  %v1948_v49 = vpop.eup %1947 }
 0x27c   : > { %v1139_v50 = vmul.f32 %v1916_v53, %v1764_v45 }
 0x27d   : > { %v980_v51 = vpop.f32.mrf.mxu1 }
 0x27e   : > { %v1562_v55 = vpack.c.bf16 %v1139_v50, %v1138_v19  ;;  %v1137_v57 = vmul.f32 %v1920_v20, %v980_v51  ;;  %v1950_v50 = vpop.eup %1949  ;;  %v856_v20 = vpop.xlane.xlu0 %855 }
 0x280   : > { %1634 = vst [vmem:[%s2286_s29 + $0x8] sm:$0xff] %v1562_v55   ;;  %v1557_v58 = vpack.c.bf16 %v1137_v57, %v1136_v54  ;;  %v1952_v55 = vpop.eup %1951  ;;  %v858_v57 = vpop.xlane.xlu1 %857 }
 0x282   : > { %1558 = vst [vmem:[%s2286_s29] sm:$0xff] %v1557_v58   ;;  %v1767_v23 = vpop.f32.mrf.mxu1 }
 0x283   : > { %v1142_v61 = vmul.f32 %v1922_v59, %v1767_v23 }
 0x284   : > { %v993_v24 = vpop.f32.mrf.mxu1 }
 0x285   : > { %v1140_v1 = vmul.f32 %v1926_v62, %v993_v24  ;;  %v860_v62 = vpop.xlane.xlu0 %859 }
 0x286   : > { %v1768_v60 = vpop.f32.mrf.mxu1  ;;  %1969 = vrcp.f32 %v860_v62 }
 0x287   : > { %v1143_v28 = vmul.f32 %v1924_v29, %v1768_v60  ;;  %v1954_v60 = vpop.eup %1953 }
 0x288   : > { %v996_v31 = vpop.f32.mrf.mxu1  ;;  %v1956_v63 = vpop.eup %1955 }
 0x289   : > { %v1572_v2 = vpack.c.bf16 %v1143_v28, %v1142_v61  ;;  %v1141_v33 = vmul.f32 %v1928_v0, %v996_v31  ;;  %v862_v61 = vpop.xlane.xlu1 %861  ;;  %v1958_v0 = vpop.eup %1957 }
 0x28a   : > { %v1771_v3 = vpop.f32.mrf.mxu1  ;;  %1971 = vrcp.f32 %v862_v61 }
 0x28b   : > { %1636 = vst [vmem:[%s2286_s29 + $0x18] sm:$0xff] %v1572_v2   ;;  %v1567_v5 = vpack.c.bf16 %v1141_v33, %v1140_v1  ;;  %v1146_v10 = vmul.f32 %v1930_v37, %v1771_v3  ;;  %v1960_v1 = vpop.eup %1959  ;;  %1973 = vrcp.f32 %v856_v20 }
 0x28c   : > { %v1009_v36 = vpop.f32.mrf.mxu1  ;;  %1975 = vrcp.f32 %v858_v57 }
 0x28d   : > { %1635 = vst [vmem:[%s2286_s29 + $0x10] sm:$0xff] %v1567_v5   ;;  %v1144_v7 = vmul.f32 %v1934_v39, %v1009_v36 }
 0x28e   : > { %v1772_v9 = vpop.f32.mrf.mxu1 }
 0x28f   : > { %v1147_v38 = vmul.f32 %v1932_v6, %v1772_v9  ;;  %v1962_v6 = vpop.eup %1961 }
 0x290   : > { %v1012_v14 = vpop.f32.mrf.mxu1  ;;  %v1964_v35 = vpop.eup %1963 }
 0x291   : > { %v1582_v8 = vpack.c.bf16 %v1147_v38, %v1146_v10  ;;  %v1145_v17 = vmul.f32 %v1936_v13, %v1012_v14  ;;  %v1966_v39 = vpop.eup %1965 }
 0x292   : > { %v1775_v42 = vpop.f32.mrf.mxu1  ;;  %v1968_v13 = vpop.eup %1967 }
 0x293   : > { %1638 = vst [vmem:[%s2286_s29 + $0x28] sm:$0xff] %v1582_v8   ;;  %v1577_v43 = vpack.c.bf16 %v1145_v17, %v1144_v7  ;;  %v1150_v26 = vmul.f32 %v1938_v11, %v1775_v42  ;;  %v1970_v21 = vpop.eup %1969 }
 0x294   : > { %v1025_v22 = vpop.f32.mrf.mxu1 }
 0x295   : > { %1637 = vst [vmem:[%s2286_s29 + $0x20] sm:$0xff] %v1577_v43   ;;  %v1148_v41 = vmul.f32 %v1942_v47, %v1025_v22 }
 0x296   : > { %v1776_v12 = vpop.f32.mrf.mxu1 }
 0x297   : > { %v1151_v48 = vmul.f32 %v1940_v25, %v1776_v12  ;;  %v1972_v22 = vpop.eup %1971 }
 0x298   : > { %v1028_v34 = vpop.f32.mrf.mxu1  ;;  %v1974_v25 = vpop.eup %1973 }
 0x299   : > { %v1592_v15 = vpack.c.bf16 %v1151_v48, %v1150_v26  ;;  %v1149_v16 = vmul.f32 %v1944_v32, %v1028_v34  ;;  %v1976_v26 = vpop.eup %1975 }
 0x29a   : > { %v1779_v53 = vpop.f32.mrf.mxu1 }
 0x29b   : > { %1640 = vst [vmem:[%s2286_s29 + $0x38] sm:$0xff] %v1592_v15   ;;  %v1587_v44 = vpack.c.bf16 %v1149_v16, %v1148_v41  ;;  %v1154_v51 = vmul.f32 %v1946_v46, %v1779_v53 }
 0x29c   : > { %v1041_v45 = vpop.f32.mrf.mxu1 }
 0x29d   : > { %1639 = vst [vmem:[%s2286_s29 + $0x30] sm:$0xff] %v1587_v44   ;;  %v1152_v27 = vmul.f32 %v1950_v50, %v1041_v45 }
 0x29e   : > { %v1780_v19 = vpop.f32.mrf.mxu1 }
 0x29f   : > { %v1155_v54 = vmul.f32 %v1948_v49, %v1780_v19 }
 0x2a0   : > { %v1044_v58 = vpop.f32.mrf.mxu1 }
 0x2a1   : > { %v1602_v56 = vpack.c.bf16 %v1155_v54, %v1154_v51  ;;  %v1153_v23 = vmul.f32 %v1952_v55, %v1044_v58 }
 0x2a2   : > { %v1783_v24 = vpop.f32.mrf.mxu1 }
 0x2a3   : > { %1642 = vst [vmem:[%s2286_s29 + $0x48] sm:$0xff] %v1602_v56   ;;  %v1597_v59 = vpack.c.bf16 %v1153_v23, %v1152_v27  ;;  %v1158_v30 = vmul.f32 %v1954_v60, %v1783_v24 }
 0x2a4   : > { %v1057_v29 = vpop.f32.mrf.mxu1 }
 0x2a5   : > { %1641 = vst [vmem:[%s2286_s29 + $0x40] sm:$0xff] %v1597_v59   ;;  %v1156_v33 = vmul.f32 %v1958_v0, %v1057_v29 }
 0x2a6   : > { %v1784_v28 = vpop.f32.mrf.mxu1 }
 0x2a7   : > { %v1159_v31 = vmul.f32 %v1956_v63, %v1784_v28 }
 0x2a8   : > { %v1060_v2 = vpop.f32.mrf.mxu1 }
 0x2a9   : > { %v1612_v3 = vpack.c.bf16 %v1159_v31, %v1158_v30  ;;  %v1157_v5 = vmul.f32 %v1960_v1, %v1060_v2 }
 0x2aa   : > { %v1787_v36 = vpop.f32.mrf.mxu1 }
 0x2ab   : > { %1644 = vst [vmem:[%s2286_s29 + $0x58] sm:$0xff] %v1612_v3   ;;  %v1607_v37 = vpack.c.bf16 %v1157_v5, %v1156_v33  ;;  %v1162_v10 = vmul.f32 %v1962_v6, %v1787_v36 }
 0x2ac   : > { %v1073_v4 = vpop.f32.mrf.mxu1 }
 0x2ad   : > { %1643 = vst [vmem:[%s2286_s29 + $0x50] sm:$0xff] %v1607_v37   ;;  %v1160_v7 = vmul.f32 %v1966_v39, %v1073_v4 }
 0x2ae   : > { %v1788_v9 = vpop.f32.mrf.mxu1 }
 0x2af   : > { %v1163_v38 = vmul.f32 %v1964_v35, %v1788_v9 }
 0x2b0   : > { %v1076_v14 = vpop.f32.mrf.mxu1 }
 0x2b1   : > { %v1622_v8 = vpack.c.bf16 %v1163_v38, %v1162_v10  ;;  %v1161_v17 = vmul.f32 %v1968_v13, %v1076_v14 }
 0x2b2   : > { %v1791_v42 = vpop.f32.mrf.mxu1 }
 0x2b3   : > { %1646 = vst [vmem:[%s2286_s29 + $0x68] sm:$0xff] %v1622_v8   ;;  %v1617_v18 = vpack.c.bf16 %v1161_v17, %v1160_v7  ;;  %v1166_v12 = vmul.f32 %v1970_v21, %v1791_v42 }
 0x2b4   : > { %v1089_v43 = vpop.f32.mrf.mxu1 }
 0x2b5   : > { %1645 = vst [vmem:[%s2286_s29 + $0x60] sm:$0xff] %v1617_v18   ;;  %v1164_v32 = vmul.f32 %v1974_v25, %v1089_v43 }
 0x2b6   : > { %v1792_v11 = vpop.f32.mrf.mxu1 }
 0x2b7   : > { %v1167_v47 = vmul.f32 %v1972_v22, %v1792_v11 }
 0x2b8   : > { %v1092_v48 = vpop.f32.mrf.mxu1 }
 0x2b9   : > { %v1632_v34 = vpack.c.bf16 %v1167_v47, %v1166_v12  ;;  %v1165_v40 = vmul.f32 %v1976_v26, %v1092_v48 }
 0x2bb   : > { %1648 = vst [vmem:[%s2286_s29 + $0x78] sm:$0xff] %v1632_v34   ;;  %v1627_v41 = vpack.c.bf16 %v1165_v40, %v1164_v32 }
 0x2bd   : > { %1647 = vst [vmem:[%s2286_s29 + $0x70] sm:$0xff] %v1627_v41  }
 0x2be PF: > { %s13_s14 = sadd.s32 1, %s1999_s14   ;;  %s2317_s12 = smov %s1995_s13 }
 0x2bf   : > { %p10_p5 = scmp.ge.s32.totalorder %s13_s14, 4   ;;  %s2318_s13 = smov %s2320_s15 }
 0x2c1   :  { %12 = sbr.rel (!%p10_p5) target bundleno = 2 (0x2), region = 68 }

// kernel: non_local_block_forward.5
= control target key start
LH: loop header
LB: loop body
LE: loop exit
PB: predicated region body
PF: predicated region fallthrough
CT: control target
= control target key end

     0   :  { %s1536_s18 = smov 0   ;;  %s1538_s19 = smov 0   ;;  %s1788_s0 = inlined_call_operand.vmem [shape: bf16[512,128], index: 0, kind: input, shape index: {}]   ;;  %s1789_s1 = inlined_call_operand.vmem [shape: bf16[128,128], index: 1, kind: input, shape index: {}]   ;;  %s1790_s2 = inlined_call_operand.vmem [shape: f32[1,128], index: 2, kind: input, shape index: {}]   ;;  %s1791_s3 = inlined_call_operand.vmem [shape: f32[1,128], index: 3, kind: input, shape index: {}]   ;;  %s1792_s4 = inlined_call_operand.vmem [shape: bf16[512,128], index: 4, kind: input, shape index: {}]   ;;  %s1793_s5 = inlined_call_operand.vmem [shape: f32[512,128], index: 5, kind: output, shape index: {}]  }
   0x1   :  { %s1540_s20 = smov 0  }
   0x2 LB: > { %s34_s21 = sadd.s32 1, %s1500_s19  ;;  %p1232_p0 = scmp.ge.s32.totalorder %s1504_s20, 1  ;;  %s1504_s20 = sphi %s1540_s20, %s15_s20   ;;  %s1500_s19 = sphi %s1538_s19, %s1795_s19   ;;  %s1496_s18 = sphi %s1536_s18, %s1794_s18  }
   0x3   : > { %p36_p1 = scmp.ge.s32.totalorder %s34_s21, 2  ;;  %p262_p2 = scmp.lt.s32.totalorder %s1504_s20, 3 }
   0x5   : > { %s1797_s21 = smov (%p36_p1, %s34_s21), 0  ;;  %p263_p3 = pnand %p1232_p0, %p262_p2 }
   0x6   : > { %s1233_s24 = sshll.u32 (!%p263_p3), %s1496_s18, 5 }
   0x7   : > { %266 = sbr.rel (%p263_p3) target bundleno = 275 (0x113), region = 40  ;;  %p319_p4 = scmp.lt.s32.totalorder (!%p263_p3), %s1233_s24, 63 }
   0xc   : > { %v1458_v0 = vld [vmem:[%s1789_s1 + $0x38] sm:$0xff]   ;;  %v1459_v1 = vld [vmem:[%s1789_s1 + $0x30] sm:$0xff]   ;;  %s1799_s24 = smov (!%p319_p4, %s1233_s24), 63  ;;  %v1460_v2 = vld [vmem:[%s1789_s1 + $0x28] sm:$0xff]  }
   0xd   : > { %1370 = vmatprep.subr.bf16.mxu0 %v1458_v0  ;;  %1418 = vmatprep.subr.bf16.mxu1 %v1458_v0  ;;  %s1234_s29 = sshll.u32 %s1799_s24, 2  ;;  %v1461_v3 = vld [vmem:[%s1789_s1 + $0x20] sm:$0xff]   ;;  %v1462_v6 = vld [vmem:[%s1789_s1 + $0x18] sm:$0xff]   ;;  %v1463_v7 = vld [vmem:[%s1789_s1 + $0x10] sm:$0xff]  }
   0xe   : > { %1371 = vmatpush3.bf16.msra.mxu0 %v1458_v0  ;;  %1426 = vmatpush3.bf16.msra.mxu1 %v1458_v0  ;;  %s1571_s7 = scalar_lea.vmem %s1788_s0, %s1234_s29  ;;  %v1464_v8 = vld [vmem:[%s1789_s1 + $0x8] sm:$0xff]   ;;  %v1465_v9 = vld [vmem:[%s1789_s1] sm:$0xff]   ;;  %s1609_s23 = scalar_lea.vmem %s1792_s4, %s1234_s29 }
   0xf   : > { %1372 = vmatprep.subr.bf16.mxu0 %v1459_v1  ;;  %1419 = vmatprep.subr.bf16.mxu1 %v1459_v1  ;;  %v1466_v4 = vld [vmem:[%s1571_s7] sm:$0xff]   ;;  %v1468_v10 = vld [vmem:[%s1571_s7 + $0x8] sm:$0xff]   ;;  %v1470_v12 = vld [vmem:[%s1571_s7 + $0x10] sm:$0xff]   ;;  %s1238_s29 = sshll.u32 %s1799_s24, 3 }
  0x10   : > { %v1467_v5 = vld [vmem:[%s1571_s7 + $0x40] sm:$0xff]   ;;  %1386 = vmatprep.mubr.bf16.mxu0 %v1466_v4  ;;  %v1469_v11 = vld [vmem:[%s1571_s7 + $0x48] sm:$0xff]   ;;  %v1471_v13 = vld [vmem:[%s1571_s7 + $0x50] sm:$0xff]   ;;  %s1635_s6 = scalar_lea.vmem %s1793_s5, %s1238_s29 }
  0x11   : > { %1402 = vmatprep.mubr.bf16.mxu1 %v1467_v5  ;;  %v1472_v14 = vld [vmem:[%s1571_s7 + $0x18] sm:$0xff]   ;;  %v1474_v16 = vld [vmem:[%s1571_s7 + $0x20] sm:$0xff]   ;;  %v1476_v18 = vld [vmem:[%s1571_s7 + $0x28] sm:$0xff]  }
  0x12   : > { %1373 = vmatpush3.bf16.msra.mxu0 %v1459_v1  ;;  %1427 = vmatpush3.bf16.msra.mxu1 %v1459_v1  ;;  %v1473_v15 = vld [vmem:[%s1571_s7 + $0x58] sm:$0xff]   ;;  %v1475_v17 = vld [vmem:[%s1571_s7 + $0x60] sm:$0xff]   ;;  %v1477_v19 = vld [vmem:[%s1571_s7 + $0x68] sm:$0xff]  }
  0x13   : > { %1374 = vmatprep.subr.bf16.mxu0 %v1460_v2  ;;  %1420 = vmatprep.subr.bf16.mxu1 %v1460_v2  ;;  %v1478_v20 = vld [vmem:[%s1571_s7 + $0x30] sm:$0xff]   ;;  %v1480_v22 = vld [vmem:[%s1571_s7 + $0x38] sm:$0xff]   ;;  %v1614_v24 = vld [vmem:[%s1790_s2] ss:$0 sm:$0xff] }
  0x14   : > { %v1479_v21 = vld [vmem:[%s1571_s7 + $0x70] sm:$0xff]   ;;  %v1481_v23 = vld [vmem:[%s1571_s7 + $0x78] sm:$0xff]   ;;  %v1331_v25 = vld [vmem:[%s1609_s23 + $0x8] sm:$0xff]  }
  0x15   : > { %v1339_v26 = vld [vmem:[%s1609_s23 + $0x48] sm:$0xff]   ;;  %v1268_v27 = vld [vmem:[%s1609_s23] sm:$0xff]   ;;  %v1273_v33 = vunpack.c.l.bf16 %v1331_v25  ;;  %v1274_v45 = vunpack.c.h.bf16 %v1331_v25  ;;  %v1640_v52 = vld [vmem:[%s1609_s23 + $0x18] sm:$0xff]  }
  0x16   : > { %1375 = vmatpush3.bf16.msra.mxu0 %v1460_v2  ;;  %1428 = vmatpush3.bf16.msra.mxu1 %v1460_v2  ;;  %v1338_v28 = vld [vmem:[%s1609_s23 + $0x40] sm:$0xff]   ;;  %v1305_v35 = vunpack.c.l.bf16 %v1339_v26  ;;  %v1269_v37 = vunpack.c.l.bf16 %v1268_v27  ;;  %v1306_v47 = vunpack.c.h.bf16 %v1339_v26  ;;  %v1643_v53 = vld [vmem:[%s1609_s23 + $0x58] sm:$0xff]   ;;  %v1270_v57 = vunpack.c.h.bf16 %v1268_v27  ;;  %v1652_v0 = vld [vmem:[%s1609_s23 + $0x10] sm:$0xff]  }
  0x17   : > { %1376 = vmatprep.subr.bf16.mxu0 %v1461_v3  ;;  %1421 = vmatprep.subr.bf16.mxu1 %v1461_v3  ;;  %v1623_v30 = vld [vmem:[%s1791_s3] ss:$0 sm:$0xff]  ;;  %v1301_v39 = vunpack.c.l.bf16 %v1338_v28  ;;  %v1302_v59 = vunpack.c.h.bf16 %v1338_v28  ;;  %v1655_v1 = vld [vmem:[%s1609_s23 + $0x50] sm:$0xff]   ;;  %v1281_v5 = vunpack.c.l.bf16 %v1640_v52  ;;  %v1282_v26 = vunpack.c.h.bf16 %v1640_v52 }
  0x18   : > { %v1314_v28 = vunpack.c.h.bf16 %v1643_v53 }
  0x1a   : > { %1377 = vmatpush3.bf16.msra.mxu0 %v1461_v3  ;;  %1429 = vmatpush3.bf16.msra.mxu1 %v1461_v3 }
  0x1b   : > { %1378 = vmatprep.subr.bf16.mxu0 %v1462_v6  ;;  %1422 = vmatprep.subr.bf16.mxu1 %v1462_v6 }
  0x1e   : > { %1379 = vmatpush3.bf16.msra.mxu0 %v1462_v6  ;;  %1430 = vmatpush3.bf16.msra.mxu1 %v1462_v6 }
  0x1f   : > { %1380 = vmatprep.subr.bf16.mxu0 %v1463_v7  ;;  %1423 = vmatprep.subr.bf16.mxu1 %v1463_v7 }
  0x22   : > { %1381 = vmatpush3.bf16.msra.mxu0 %v1463_v7  ;;  %1431 = vmatpush3.bf16.msra.mxu1 %v1463_v7  ;;  %v1313_v7 = vunpack.c.l.bf16 %v1643_v53 }
  0x23   : > { %1382 = vmatprep.subr.bf16.mxu0 %v1464_v8  ;;  %1424 = vmatprep.subr.bf16.mxu1 %v1464_v8 }
  0x26   : > { %1383 = vmatpush3.bf16.msra.mxu0 %v1464_v8  ;;  %1432 = vmatpush3.bf16.msra.mxu1 %v1464_v8 }
  0x27   : > { %1384 = vmatprep.subr.bf16.mxu0 %v1465_v9  ;;  %1425 = vmatprep.subr.bf16.mxu1 %v1465_v9 }
  0x2a   : > { %1385 = vmatpush3.bf16.msra.mxu0 %v1465_v9  ;;  %1433 = vmatpush3.bf16.msra.mxu1 %v1465_v9 }
  0x2d   : > { %1387 = vmatmul.mubr.bf16.vlgmr.msra.gmra.mxu0 %v1468_v10  ;;  %1403 = vmatmul.mubr.bf16.vlgmr.msra.gmra.mxu1 %v1469_v11 }
  0x2e   : > { %1390 = vmatprep.mubr.bf16.mxu0 %v1470_v12  ;;  %1406 = vmatprep.mubr.bf16.mxu1 %v1471_v13 }
  0x35   : > { %1391 = vmatmul.mubr.bf16.gmra.mxu0 %v1472_v14  ;;  %1407 = vmatmul.mubr.bf16.gmra.mxu1 %v1473_v15  ;;  %v1277_v15 = vunpack.c.l.bf16 %v1652_v0 }
  0x36   : > { %1394 = vmatprep.mubr.bf16.mxu0 %v1474_v16  ;;  %1410 = vmatprep.mubr.bf16.mxu1 %v1475_v17  ;;  %v1309_v17 = vunpack.c.l.bf16 %v1655_v1 }
  0x3d   : > { %1395 = vmatmul.mubr.bf16.gmra.mxu0 %v1476_v18  ;;  %1411 = vmatmul.mubr.bf16.gmra.mxu1 %v1477_v19 }
  0x3e   : > { %1398 = vmatprep.mubr.bf16.mxu0 %v1478_v20  ;;  %1414 = vmatprep.mubr.bf16.mxu1 %v1479_v21 }
  0x45   : > { %1399 = vmatmul.mubr.bf16.gmra.mxu0 %v1480_v22  ;;  %1415 = vmatmul.mubr.bf16.gmra.mxu1 %v1481_v23 }
  0xed   : > { %v1388_v29 = vpop.f32.mrf.mxu0  ;;  %v1404_v31 = vpop.f32.mrf.mxu1 }
  0xee   : > { %v890_v32 = vmul.f32 %v1388_v29, %v1614_v24  ;;  %v906_v34 = vmul.f32 %v1404_v31, %v1614_v24 }
  0xef   : > { %v655_v36 = vpop.f32.mrf.mxu0  ;;  %v719_v38 = vpop.f32.mrf.mxu1 }
  0xf0   : > { %v929_v40 = vadd.f32 %v1623_v30, %v890_v32  ;;  %v945_v41 = vadd.f32 %v1623_v30, %v906_v34  ;;  %v888_v42 = vmul.f32 %v1614_v24, %v655_v36  ;;  %v904_v43 = vmul.f32 %v1614_v24, %v719_v38  ;;  %v1682_v34 = vld [vmem:[%s1609_s23 + $0x28] sm:$0xff]  }
  0xf1   : > { %v1389_v44 = vpop.f32.mrf.mxu0  ;;  %v1405_v46 = vpop.f32.mrf.mxu1 }
  0xf2   : > { %v1025_v48 = vadd.f32 %v1273_v33, %v929_v40  ;;  %v1041_v49 = vadd.f32 %v1305_v35, %v945_v41  ;;  %v927_v50 = vadd.f32 %v1623_v30, %v888_v42  ;;  %v943_v51 = vadd.f32 %v1623_v30, %v904_v43  ;;  %v1685_v35 = vld [vmem:[%s1609_s23 + $0x68] sm:$0xff]  }
  0xf3   : > { %v891_v54 = vmul.f32 %v1389_v44, %v1614_v24  ;;  %v907_v55 = vmul.f32 %v1405_v46, %v1614_v24  ;;  %v658_v56 = vpop.f32.mrf.mxu0  ;;  %v722_v58 = vpop.f32.mrf.mxu1  ;;  %v1310_v41 = vunpack.c.h.bf16 %v1655_v1  ;;  %v1698_v46 = vld [vmem:[%s1609_s23 + $0x20] sm:$0xff]   ;;  %v1321_v53 = vunpack.c.l.bf16 %v1685_v35 }
  0xf4   : > { %1057 = vst [vmem:[%s1635_s6 + $0x10] sm:$0xff] %v1025_v48  ;;  %1073 = vst [vmem:[%s1635_s6 + $0x90] sm:$0xff] %v1041_v49  ;;  %v1023_v60 = vadd.f32 %v1269_v37, %v927_v50  ;;  %v1039_v61 = vadd.f32 %v1301_v39, %v943_v51  ;;  %v889_v62 = vmul.f32 %v1614_v24, %v658_v56  ;;  %v1278_v39 = vunpack.c.h.bf16 %v1652_v0 }
  0xf5   : > { %v905_v63 = vmul.f32 %v1614_v24, %v722_v58  ;;  %v930_v2 = vadd.f32 %v1623_v30, %v891_v54  ;;  %v946_v3 = vadd.f32 %v1623_v30, %v907_v55  ;;  %v1392_v4 = vpop.f32.mrf.mxu0  ;;  %v1408_v6 = vpop.f32.mrf.mxu1  ;;  %v1289_v51 = vunpack.c.l.bf16 %v1682_v34 }
  0xf6   : > { %1055 = vst [vmem:[%s1635_s6] sm:$0xff] %v1023_v60  ;;  %1071 = vst [vmem:[%s1635_s6 + $0x80] sm:$0xff] %v1039_v61  ;;  %v928_v8 = vadd.f32 %v1623_v30, %v889_v62  ;;  %v894_v10 = vmul.f32 %v1392_v4, %v1614_v24  ;;  %v910_v11 = vmul.f32 %v1408_v6, %v1614_v24  ;;  %v1285_v61 = vunpack.c.l.bf16 %v1698_v46 }
  0xf7   : > { %v944_v9 = vadd.f32 %v1623_v30, %v905_v63  ;;  %v1026_v12 = vadd.f32 %v1274_v45, %v930_v2  ;;  %v1042_v13 = vadd.f32 %v1306_v47, %v946_v3  ;;  %v671_v14 = vpop.f32.mrf.mxu0  ;;  %v735_v16 = vpop.f32.mrf.mxu1  ;;  %v1701_v47 = vld [vmem:[%s1609_s23 + $0x60] sm:$0xff]  }
  0xf8   : > { %v1024_v18 = vadd.f32 %v1270_v57, %v928_v8  ;;  %v933_v20 = vadd.f32 %v1623_v30, %v894_v10  ;;  %v949_v21 = vadd.f32 %v1623_v30, %v910_v11  ;;  %v892_v22 = vmul.f32 %v1614_v24, %v671_v14  ;;  %v1728_v14 = vld [vmem:[%s1609_s23 + $0x38] sm:$0xff]  }
  0xf9   : > { %v1040_v19 = vadd.f32 %v1302_v59, %v944_v9  ;;  %1058 = vst [vmem:[%s1635_s6 + $0x18] sm:$0xff] %v1026_v12  ;;  %1074 = vst [vmem:[%s1635_s6 + $0x98] sm:$0xff] %v1042_v13  ;;  %v908_v23 = vmul.f32 %v1614_v24, %v735_v16  ;;  %v1393_v25 = vpop.f32.mrf.mxu0  ;;  %v1409_v27 = vpop.f32.mrf.mxu1  ;;  %v1317_v63 = vunpack.c.l.bf16 %v1701_v47  ;;  %v1322_v9 = vunpack.c.h.bf16 %v1685_v35 }
  0xfa   : > { %1056 = vst [vmem:[%s1635_s6 + $0x8] sm:$0xff] %v1024_v18  ;;  %v1029_v29 = vadd.f32 %v1281_v5, %v933_v20  ;;  %v1045_v31 = vadd.f32 %v1313_v7, %v949_v21  ;;  %v895_v32 = vmul.f32 %v1393_v25, %v1614_v24  ;;  %v911_v33 = vmul.f32 %v1409_v27, %v1614_v24  ;;  %v1336_v27 = vld [vmem:[%s1609_s23 + $0x30] sm:$0xff]  }
  0xfb   : > { %1072 = vst [vmem:[%s1635_s6 + $0x88] sm:$0xff] %v1040_v19  ;;  %v931_v36 = vadd.f32 %v1623_v30, %v892_v22  ;;  %v947_v37 = vadd.f32 %v1623_v30, %v908_v23  ;;  %v674_v38 = vpop.f32.mrf.mxu0  ;;  %v738_v40 = vpop.f32.mrf.mxu1  ;;  %v1290_v7 = vunpack.c.h.bf16 %v1682_v34  ;;  %v1286_v19 = vunpack.c.h.bf16 %v1698_v46 }
  0xfc   : > { %1061 = vst [vmem:[%s1635_s6 + $0x30] sm:$0xff] %v1029_v29  ;;  %1077 = vst [vmem:[%s1635_s6 + $0xb0] sm:$0xff] %v1045_v31  ;;  %v934_v42 = vadd.f32 %v1623_v30, %v895_v32  ;;  %v950_v43 = vadd.f32 %v1623_v30, %v911_v33  ;;  %v893_v44 = vmul.f32 %v1614_v24, %v674_v38  ;;  %v1318_v21 = vunpack.c.h.bf16 %v1701_v47 }
  0xfd   : > { %v909_v45 = vmul.f32 %v1614_v24, %v738_v40  ;;  %v1027_v48 = vadd.f32 %v1277_v15, %v931_v36  ;;  %v1043_v49 = vadd.f32 %v1309_v17, %v947_v37  ;;  %v1396_v50 = vpop.f32.mrf.mxu0  ;;  %v1412_v52 = vpop.f32.mrf.mxu1  ;;  %v1731_v15 = vld [vmem:[%s1609_s23 + $0x78] sm:$0xff]   ;;  %v1297_v33 = vunpack.c.l.bf16 %v1728_v14 }
  0xfe   : > { %v1030_v54 = vadd.f32 %v1282_v26, %v934_v42  ;;  %v1046_v55 = vadd.f32 %v1314_v28, %v950_v43  ;;  %v932_v56 = vadd.f32 %v1623_v30, %v893_v44  ;;  %v898_v58 = vmul.f32 %v1396_v50, %v1614_v24  ;;  %v1344_v28 = vld [vmem:[%s1609_s23 + $0x70] sm:$0xff]  }
  0xff   : > { %v948_v57 = vadd.f32 %v1623_v30, %v909_v45  ;;  %1059 = vst [vmem:[%s1635_s6 + $0x20] sm:$0xff] %v1027_v48  ;;  %1075 = vst [vmem:[%s1635_s6 + $0xa0] sm:$0xff] %v1043_v49  ;;  %v914_v59 = vmul.f32 %v1412_v52, %v1614_v24  ;;  %v687_v60 = vpop.f32.mrf.mxu0  ;;  %v751_v62 = vpop.f32.mrf.mxu1  ;;  %v1329_v35 = vunpack.c.l.bf16 %v1731_v15  ;;  %v1293_v43 = vunpack.c.l.bf16 %v1336_v27 }
 0x100   : > { %1062 = vst [vmem:[%s1635_s6 + $0x38] sm:$0xff] %v1030_v54  ;;  %1078 = vst [vmem:[%s1635_s6 + $0xb8] sm:$0xff] %v1046_v55  ;;  %v1028_v0 = vadd.f32 %v1278_v39, %v932_v56  ;;  %v896_v2 = vmul.f32 %v1614_v24, %v687_v60  ;;  %v912_v3 = vmul.f32 %v1614_v24, %v751_v62  ;;  %v1325_v45 = vunpack.c.l.bf16 %v1344_v28 }
 0x101   : > { %v1044_v1 = vadd.f32 %v1310_v41, %v948_v57  ;;  %v937_v4 = vadd.f32 %v1623_v30, %v898_v58  ;;  %v953_v5 = vadd.f32 %v1623_v30, %v914_v59  ;;  %v1397_v6 = vpop.f32.mrf.mxu0  ;;  %v1413_v8 = vpop.f32.mrf.mxu1  ;;  %v1330_v55 = vunpack.c.h.bf16 %v1731_v15 }
 0x102   : > { %1060 = vst [vmem:[%s1635_s6 + $0x28] sm:$0xff] %v1028_v0  ;;  %v935_v10 = vadd.f32 %v1623_v30, %v896_v2  ;;  %v951_v11 = vadd.f32 %v1623_v30, %v912_v3  ;;  %v899_v12 = vmul.f32 %v1397_v6, %v1614_v24  ;;  %v915_v13 = vmul.f32 %v1413_v8, %v1614_v24 }
 0x103   : > { %1076 = vst [vmem:[%s1635_s6 + $0xa8] sm:$0xff] %v1044_v1  ;;  %v1033_v16 = vadd.f32 %v1289_v51, %v937_v4  ;;  %v1049_v17 = vadd.f32 %v1321_v53, %v953_v5  ;;  %v690_v18 = vpop.f32.mrf.mxu0  ;;  %v754_v20 = vpop.f32.mrf.mxu1  ;;  %v1298_v53 = vunpack.c.h.bf16 %v1728_v14  ;;  %v1326_v1 = vunpack.c.h.bf16 %v1344_v28 }
 0x104   : > { %v1031_v22 = vadd.f32 %v1285_v61, %v935_v10  ;;  %v1047_v23 = vadd.f32 %v1317_v63, %v951_v11  ;;  %v938_v25 = vadd.f32 %v1623_v30, %v899_v12  ;;  %v954_v26 = vadd.f32 %v1623_v30, %v915_v13 }
 0x105   : > { %1065 = vst [vmem:[%s1635_s6 + $0x50] sm:$0xff] %v1033_v16  ;;  %1081 = vst [vmem:[%s1635_s6 + $0xd0] sm:$0xff] %v1049_v17  ;;  %v897_v29 = vmul.f32 %v1614_v24, %v690_v18  ;;  %v913_v31 = vmul.f32 %v1614_v24, %v754_v20  ;;  %v1400_v32 = vpop.f32.mrf.mxu0  ;;  %v1416_v34 = vpop.f32.mrf.mxu1  ;;  %v1294_v63 = vunpack.c.h.bf16 %v1336_v27 }
 0x106   : > { %1063 = vst [vmem:[%s1635_s6 + $0x40] sm:$0xff] %v1031_v22  ;;  %1079 = vst [vmem:[%s1635_s6 + $0xc0] sm:$0xff] %v1047_v23  ;;  %v1034_v36 = vadd.f32 %v1290_v7, %v938_v25  ;;  %v1050_v37 = vadd.f32 %v1322_v9, %v954_v26  ;;  %v902_v38 = vmul.f32 %v1400_v32, %v1614_v24 }
 0x107   : > { %v918_v39 = vmul.f32 %v1416_v34, %v1614_v24  ;;  %v936_v40 = vadd.f32 %v1623_v30, %v897_v29  ;;  %v952_v41 = vadd.f32 %v1623_v30, %v913_v31  ;;  %v703_v42 = vpop.f32.mrf.mxu0  ;;  %v767_v44 = vpop.f32.mrf.mxu1 }
 0x108   : > { %1066 = vst [vmem:[%s1635_s6 + $0x58] sm:$0xff] %v1034_v36  ;;  %1082 = vst [vmem:[%s1635_s6 + $0xd8] sm:$0xff] %v1050_v37  ;;  %v941_v46 = vadd.f32 %v1623_v30, %v902_v38  ;;  %v900_v48 = vmul.f32 %v1614_v24, %v703_v42  ;;  %v916_v49 = vmul.f32 %v1614_v24, %v767_v44 }
 0x109   : > { %v957_v47 = vadd.f32 %v1623_v30, %v918_v39  ;;  %v1032_v50 = vadd.f32 %v1286_v19, %v936_v40  ;;  %v1048_v51 = vadd.f32 %v1318_v21, %v952_v41  ;;  %v1401_v52 = vpop.f32.mrf.mxu0  ;;  %v1417_v54 = vpop.f32.mrf.mxu1 }
 0x10a   : > { %v1037_v56 = vadd.f32 %v1297_v33, %v941_v46  ;;  %v939_v58 = vadd.f32 %v1623_v30, %v900_v48  ;;  %v955_v59 = vadd.f32 %v1623_v30, %v916_v49  ;;  %v903_v60 = vmul.f32 %v1401_v52, %v1614_v24 }
 0x10b   : > { %v1053_v57 = vadd.f32 %v1329_v35, %v957_v47  ;;  %1064 = vst [vmem:[%s1635_s6 + $0x48] sm:$0xff] %v1032_v50  ;;  %1080 = vst [vmem:[%s1635_s6 + $0xc8] sm:$0xff] %v1048_v51  ;;  %v919_v61 = vmul.f32 %v1417_v54, %v1614_v24  ;;  %v706_v62 = vpop.f32.mrf.mxu0  ;;  %v770_v0 = vpop.f32.mrf.mxu1 }
 0x10c   : > { %1069 = vst [vmem:[%s1635_s6 + $0x70] sm:$0xff] %v1037_v56  ;;  %v1035_v2 = vadd.f32 %v1293_v43, %v939_v58  ;;  %v1051_v3 = vadd.f32 %v1325_v45, %v955_v59  ;;  %v901_v4 = vmul.f32 %v1614_v24, %v706_v62  ;;  %v917_v5 = vmul.f32 %v1614_v24, %v770_v0 }
 0x10d   : > { %1085 = vst [vmem:[%s1635_s6 + $0xf0] sm:$0xff] %v1053_v57  ;;  %v942_v6 = vadd.f32 %v1623_v30, %v903_v60  ;;  %v958_v7 = vadd.f32 %v1623_v30, %v919_v61 }
 0x10e   : > { %1067 = vst [vmem:[%s1635_s6 + $0x60] sm:$0xff] %v1035_v2  ;;  %1083 = vst [vmem:[%s1635_s6 + $0xe0] sm:$0xff] %v1051_v3  ;;  %v940_v8 = vadd.f32 %v1623_v30, %v901_v4  ;;  %v956_v9 = vadd.f32 %v1623_v30, %v917_v5 }
 0x10f   : > { %v1038_v10 = vadd.f32 %v1298_v53, %v942_v6  ;;  %v1054_v11 = vadd.f32 %v1330_v55, %v958_v7 }
 0x110   : > { %v1036_v12 = vadd.f32 %v1294_v63, %v940_v8  ;;  %v1052_v13 = vadd.f32 %v1326_v1, %v956_v9 }
 0x111   : > { %1070 = vst [vmem:[%s1635_s6 + $0x78] sm:$0xff] %v1038_v10  ;;  %1086 = vst [vmem:[%s1635_s6 + $0xf8] sm:$0xff] %v1054_v11 }
 0x112   : > { %1068 = vst [vmem:[%s1635_s6 + $0x68] sm:$0xff] %v1036_v12  ;;  %1084 = vst [vmem:[%s1635_s6 + $0xe8] sm:$0xff] %v1052_v13 }
 0x113 PF: > { %s15_s20 = sadd.s32 1, %s1504_s20   ;;  %s1794_s18 = smov %s1500_s19 }
 0x114   : > { %p12_p5 = scmp.ge.s32.totalorder %s15_s20, 4   ;;  %s1795_s19 = smov %s1797_s21 }
 0x116   :  { %14 = sbr.rel (!%p12_p5) target bundleno = 2 (0x2), region = 90 }

// kernel: non_local_block_forward.3
= control target key start
LH: loop header
LB: loop body
LE: loop exit
PB: predicated region body
PF: predicated region fallthrough
CT: control target
= control target key end

     0   :  { %s2415_s12 = smov 0   ;;  %s2417_s13 = smov 0   ;;  %s2747_s0 = inlined_call_operand.vmem [shape: bf16[512,128], index: 0, kind: input, shape index: {}]   ;;  %s2748_s1 = inlined_call_operand.vmem [shape: bf16[128,384], index: 1, kind: input, shape index: {}]   ;;  %s2749_s2 = inlined_call_operand.vmem [shape: f32[1,384], index: 2, kind: input, shape index: {}]   ;;  %s2750_s3 = inlined_call_operand.vmem [shape: bf16[512,384], index: 3, kind: output, shape index: {}]  }
   0x1   :  { %s2419_s14 = smov 0  }
   0x2 LB: > { %s32_s15 = sadd.s32 1, %s2388_s13  ;;  %p2033_p0 = scmp.ge.s32.totalorder %s2392_s14, 1  ;;  %s2392_s14 = sphi %s2419_s14, %s13_s14   ;;  %s2388_s13 = sphi %s2417_s13, %s2752_s13   ;;  %s2384_s12 = sphi %s2415_s12, %s2751_s12  }
   0x3   : > { %p34_p1 = scmp.ge.s32.totalorder %s32_s15, 2  ;;  %p193_p2 = scmp.lt.s32.totalorder %s2392_s14, 3 }
   0x5   : > { %s2754_s15 = smov (%p34_p1, %s32_s15), 0  ;;  %p194_p3 = pnand %p2033_p0, %p193_p2 }
   0x6   : > { %s2034_s18 = sshll.u32 (!%p194_p3), %s2384_s12, 5 }
   0x7   : > { %197 = sbr.rel (%p194_p3) target bundleno = 338 (0x152), region = 32  ;;  %p240_p4 = scmp.lt.s32.totalorder (!%p194_p3), %s2034_s18, 63 }
   0xc   : > { %v2322_v0 = vld [vmem:[%s2748_s1 + $0xac] ss:$12 sps:$4 sm:$0xff]   ;;  %v2324_v1 = vld [vmem:[%s2748_s1 + $0xa8] ss:$12 sps:$4 sm:$0xff]   ;;  %v2394_v2 = vmov 0   ;;  %s2756_s18 = smov (!%p240_p4, %s2034_s18), 63  ;;  %v1409_v41 = vlaneseq }
   0xd   : > { %794 = vmatprep.mubr.bf16.mxu0 %v2394_v2  ;;  %914 = vmatprep.mubr.bf16.mxu1 %v2394_v2  ;;  %v2325_v3 = vld [vmem:[%s2748_s1 + $0x94] ss:$12 sps:$4 sm:$0xff]   ;;  %v2327_v4 = vld [vmem:[%s2748_s1 + $0x90] ss:$12 sps:$4 sm:$0xff]   ;;  %s2035_s27 = sshll.u32 %s2756_s18, 2  ;;  %s2296_s25 = smul.u32 12, %s2756_s18 }
   0xe   : > { %762 = vmatprep.subr.bf16.mxu0 %v2322_v0  ;;  %2280 = vmatprep.subr.bf16.mxu1 %v2322_v0  ;;  %v2328_v5 = vld [vmem:[%s2748_s1 + $0x7c] ss:$12 sps:$4 sm:$0xff]   ;;  %v2330_v6 = vld [vmem:[%s2748_s1 + $0x78] ss:$12 sps:$4 sm:$0xff]   ;;  %s2462_s7 = scalar_lea.vmem %s2747_s0, %s2035_s27  ;;  %v2333_v8 = vld [vmem:[%s2748_s1 + $0x60] ss:$12 sps:$4 sm:$0xff]  }
   0xf   : > { %763 = vmatpush1.bf16.msra.mxu0 %v2324_v1  ;;  %2288 = vmatpush1.bf16.msra.mxu1 %v2324_v1  ;;  %v2331_v7 = vld [vmem:[%s2748_s1 + $0x64] ss:$12 sps:$4 sm:$0xff]   ;;  %v2334_v9 = vld [vmem:[%s2748_s1 + $0x4c] ss:$12 sps:$4 sm:$0xff]   ;;  %v2336_v10 = vld [vmem:[%s2748_s1 + $0x48] ss:$12 sps:$4 sm:$0xff]   ;;  %s2576_s28 = scalar_lea.vmem %s2750_s3, %s2296_s25 }
  0x10   : > { %764 = vmatprep.subr.bf16.mxu0 %v2325_v3  ;;  %2281 = vmatprep.subr.bf16.mxu1 %v2325_v3  ;;  %v2337_v11 = vld [vmem:[%s2748_s1 + $0x34] ss:$12 sps:$4 sm:$0xff]   ;;  %v2339_v12 = vld [vmem:[%s2748_s1 + $0x30] ss:$12 sps:$4 sm:$0xff]   ;;  %v2342_v14 = vld [vmem:[%s2748_s1 + $0x18] ss:$12 sps:$4 sm:$0xff]  }
  0x11   : > { %v2340_v13 = vld [vmem:[%s2748_s1 + $0x1c] ss:$12 sps:$4 sm:$0xff]   ;;  %v2343_v15 = vld [vmem:[%s2748_s1 + $0x4] ss:$12 sps:$4 sm:$0xff]   ;;  %v2345_v16 = vld [vmem:[%s2748_s1] ss:$12 sps:$4 sm:$0xff]  }
  0x12   : > { %v2348_v17 = vld [vmem:[%s2748_s1 + $0xb0] ss:$12 sps:$4 sm:$0xff]   ;;  %v2346_v18 = vld [vmem:[%s2462_s7] sm:$0xff]   ;;  %v2350_v22 = vld [vmem:[%s2462_s7 + $0x8] sm:$0xff]   ;;  %v2553_v42 = vshrl.u32 %v1409_v41, 7 }
  0x13   : > { %765 = vmatpush1.bf16.msra.mxu0 %v2327_v4  ;;  %2289 = vmatpush1.bf16.msra.mxu1 %v2327_v4  ;;  %v2496_v19 = vld [vmem:[%s2462_s7 + $0x60] sm:$0xff]   ;;  %v2509_v23 = vld [vmem:[%s2462_s7 + $0x68] sm:$0xff]   ;;  %v2356_v25 = vld [vmem:[%s2748_s1 + $0x50] ss:$12 sps:$4 sm:$0xff]  }
  0x14   : > { %766 = vmatprep.subr.bf16.mxu0 %v2328_v5  ;;  %2282 = vmatprep.subr.bf16.mxu1 %v2328_v5  ;;  %v2349_v20 = vld [vmem:[%s2748_s1 + $0x98] ss:$12 sps:$4 sm:$0xff]   ;;  %v2352_v21 = vld [vmem:[%s2748_s1 + $0x80] ss:$12 sps:$4 sm:$0xff]   ;;  %v2353_v24 = vld [vmem:[%s2748_s1 + $0x68] ss:$12 sps:$4 sm:$0xff]  }
  0x15   : > { %v2354_v26 = vld [vmem:[%s2462_s7 + $0x10] sm:$0xff]   ;;  %v2357_v28 = vld [vmem:[%s2748_s1 + $0x38] ss:$12 sps:$4 sm:$0xff]   ;;  %v2360_v29 = vld [vmem:[%s2748_s1 + $0x20] ss:$12 sps:$4 sm:$0xff]   ;;  %v1411_v43 = vsub.s32 0, %v2553_v42 }
  0x16   : > { %v2355_v27 = vld [vmem:[%s2462_s7 + $0x70] sm:$0xff]   ;;  %v2358_v30 = vld [vmem:[%s2462_s7 + $0x18] sm:$0xff]   ;;  %v2362_v33 = vld [vmem:[%s2462_s7 + $0x20] sm:$0xff]   ;;  %v1415_v44 = vsub.s32 1, %v2553_v42 }
  0x17   : > { %767 = vmatpush1.bf16.msra.mxu0 %v2330_v6  ;;  %2290 = vmatpush1.bf16.msra.mxu1 %v2330_v6  ;;  %v2359_v31 = vld [vmem:[%s2462_s7 + $0x78] sm:$0xff]   ;;  %v2361_v32 = vld [vmem:[%s2748_s1 + $0x8] ss:$12 sps:$4 sm:$0xff]   ;;  %v2366_v37 = vld [vmem:[%s2462_s7 + $0x40] sm:$0xff]  }
  0x18   : > { %768 = vmatprep.subr.bf16.mxu0 %v2331_v7  ;;  %2283 = vmatprep.subr.bf16.mxu1 %v2331_v7  ;;  %v2363_v34 = vld [vmem:[%s2462_s7 + $0x28] sm:$0xff]   ;;  %v2364_v35 = vld [vmem:[%s2462_s7 + $0x30] sm:$0xff]   ;;  %v2365_v36 = vld [vmem:[%s2462_s7 + $0x38] sm:$0xff]  }
  0x19   : > { %v2367_v38 = vld [vmem:[%s2462_s7 + $0x48] sm:$0xff]   ;;  %v2368_v39 = vld [vmem:[%s2462_s7 + $0x50] sm:$0xff]   ;;  %v2369_v40 = vld [vmem:[%s2462_s7 + $0x58] sm:$0xff]  }
  0x1a   : > { %v2560_v45 = vld [vmem:[%s2749_s2] sm:$0x7] }
  0x1b   : > { %769 = vmatpush1.bf16.msra.mxu0 %v2333_v8  ;;  %2291 = vmatpush1.bf16.msra.mxu1 %v2333_v8  ;;  %v2563_v46 = vrot.slane %v2560_v45, %v1411_v43  ;;  %v2566_v47 = vrot.slane %v2560_v45, %v1415_v44 }
  0x1c   : > { %770 = vmatprep.subr.bf16.mxu0 %v2334_v9  ;;  %2284 = vmatprep.subr.bf16.mxu1 %v2334_v9 }
  0x1f   : > { %771 = vmatpush1.bf16.msra.mxu0 %v2336_v10  ;;  %2292 = vmatpush1.bf16.msra.mxu1 %v2336_v10 }
  0x20   : > { %772 = vmatprep.subr.bf16.mxu0 %v2337_v11  ;;  %2285 = vmatprep.subr.bf16.mxu1 %v2337_v11 }
  0x23   : > { %773 = vmatpush1.bf16.msra.mxu0 %v2339_v12  ;;  %2293 = vmatpush1.bf16.msra.mxu1 %v2339_v12 }
  0x24   : > { %774 = vmatprep.subr.bf16.mxu0 %v2340_v13  ;;  %2286 = vmatprep.subr.bf16.mxu1 %v2340_v13 }
  0x27   : > { %775 = vmatpush1.bf16.msra.mxu0 %v2342_v14  ;;  %2294 = vmatpush1.bf16.msra.mxu1 %v2342_v14 }
  0x28   : > { %776 = vmatprep.subr.bf16.mxu0 %v2343_v15  ;;  %2287 = vmatprep.subr.bf16.mxu1 %v2343_v15 }
  0x2b   : > { %777 = vmatpush1.bf16.msra.mxu0 %v2345_v16  ;;  %2295 = vmatpush1.bf16.msra.mxu1 %v2345_v16 }
  0x2c   : > { %2232 = vmatprep.subr.bf16.mxu1 %v2348_v17 }
  0x2e   : > { %795 = vmatmul.mubr.bf16.vlgmr.msra.gmra.mxu0 %v2346_v18  ;;  %915 = vmatmul.mubr.bf16.vlgmr.msra.gmra.mxu1 %v2496_v19 }
  0x2f   : > { %2233 = vmatpush3.bf16.msra.mxu1 %v2348_v17  ;;  %804 = vmatprep.mubr.bf16.mxu0 %v2394_v2 }
  0x30   : > { %2234 = vmatprep.subr.bf16.mxu1 %v2349_v20  ;;  %924 = vmatprep.mubr.bf16.mxu1 %v2394_v2 }
  0x33   : > { %2235 = vmatpush3.bf16.msra.mxu1 %v2349_v20 }
  0x34   : > { %2236 = vmatprep.subr.bf16.mxu1 %v2352_v21 }
  0x36   : > { %805 = vmatmul.mubr.bf16.gmra.mxu0 %v2350_v22  ;;  %925 = vmatmul.mubr.bf16.gmra.mxu1 %v2509_v23 }
  0x37   : > { %2237 = vmatpush3.bf16.msra.mxu1 %v2352_v21  ;;  %814 = vmatprep.mubr.bf16.mxu0 %v2394_v2 }
  0x38   : > { %2238 = vmatprep.subr.bf16.mxu1 %v2353_v24  ;;  %934 = vmatprep.mubr.bf16.mxu1 %v2394_v2 }
  0x3b   : > { %2239 = vmatpush3.bf16.msra.mxu1 %v2353_v24 }
  0x3c   : > { %2240 = vmatprep.subr.bf16.mxu1 %v2356_v25 }
  0x3e   : > { %815 = vmatmul.mubr.bf16.gmra.mxu0 %v2354_v26  ;;  %935 = vmatmul.mubr.bf16.gmra.mxu1 %v2355_v27 }
  0x3f   : > { %2241 = vmatpush3.bf16.msra.mxu1 %v2356_v25  ;;  %824 = vmatprep.mubr.bf16.mxu0 %v2394_v2 }
  0x40   : > { %2242 = vmatprep.subr.bf16.mxu1 %v2357_v28  ;;  %944 = vmatprep.mubr.bf16.mxu1 %v2394_v2 }
  0x43   : > { %2243 = vmatpush3.bf16.msra.mxu1 %v2357_v28 }
  0x44   : > { %2244 = vmatprep.subr.bf16.mxu1 %v2360_v29 }
  0x46   : > { %825 = vmatmul.mubr.bf16.gmra.mxu0 %v2358_v30  ;;  %945 = vmatmul.mubr.bf16.gmra.mxu1 %v2359_v31 }
  0x47   : > { %2245 = vmatpush3.bf16.msra.mxu1 %v2360_v29  ;;  %834 = vmatprep.mubr.bf16.mxu0 %v2394_v2 }
  0x48   : > { %2246 = vmatprep.subr.bf16.mxu1 %v2361_v32  ;;  %2248 = vmatprep.mubr.bf16.mxu1 %v2346_v18 }
  0x4b   : > { %2247 = vmatpush3.bf16.msra.mxu1 %v2361_v32 }
  0x4e   : > { %835 = vmatmul.mubr.bf16.gmra.mxu0 %v2362_v33  ;;  %2249 = vmatmul.mubr.bf16.vlgmr.msra.gmra.mxu1 %v2350_v22 }
  0x4f   : > { %844 = vmatprep.mubr.bf16.mxu0 %v2394_v2  ;;  %2252 = vmatprep.mubr.bf16.mxu1 %v2354_v26 }
  0x56   : > { %845 = vmatmul.mubr.bf16.gmra.mxu0 %v2363_v34  ;;  %2253 = vmatmul.mubr.bf16.gmra.mxu1 %v2358_v30 }
  0x57   : > { %854 = vmatprep.mubr.bf16.mxu0 %v2394_v2  ;;  %2256 = vmatprep.mubr.bf16.mxu1 %v2362_v33 }
  0x5e   : > { %855 = vmatmul.mubr.bf16.gmra.mxu0 %v2364_v35  ;;  %2257 = vmatmul.mubr.bf16.gmra.mxu1 %v2363_v34 }
  0x5f   : > { %864 = vmatprep.mubr.bf16.mxu0 %v2394_v2  ;;  %2260 = vmatprep.mubr.bf16.mxu1 %v2364_v35 }
  0x66   : > { %865 = vmatmul.mubr.bf16.gmra.mxu0 %v2365_v36  ;;  %2261 = vmatmul.mubr.bf16.gmra.mxu1 %v2365_v36 }
  0x67   : > { %874 = vmatprep.mubr.bf16.mxu0 %v2394_v2  ;;  %2264 = vmatprep.mubr.bf16.mxu1 %v2366_v37 }
  0x6e   : > { %875 = vmatmul.mubr.bf16.gmra.mxu0 %v2366_v37  ;;  %2265 = vmatmul.mubr.bf16.gmra.mxu1 %v2367_v38 }
  0x6f   : > { %884 = vmatprep.mubr.bf16.mxu0 %v2394_v2  ;;  %2268 = vmatprep.mubr.bf16.mxu1 %v2368_v39 }
  0x76   : > { %885 = vmatmul.mubr.bf16.gmra.mxu0 %v2367_v38  ;;  %2269 = vmatmul.mubr.bf16.gmra.mxu1 %v2369_v40 }
  0x77   : > { %894 = vmatprep.mubr.bf16.mxu0 %v2394_v2  ;;  %2272 = vmatprep.mubr.bf16.mxu1 %v2496_v19 }
  0x7e   : > { %895 = vmatmul.mubr.bf16.gmra.mxu0 %v2368_v39  ;;  %2273 = vmatmul.mubr.bf16.gmra.mxu1 %v2509_v23 }
  0x7f   : > { %904 = vmatprep.mubr.bf16.mxu0 %v2394_v2  ;;  %2276 = vmatprep.mubr.bf16.mxu1 %v2355_v27 }
  0x86   : > { %905 = vmatmul.mubr.bf16.gmra.mxu0 %v2369_v40  ;;  %2277 = vmatmul.mubr.bf16.gmra.mxu1 %v2359_v31 }
  0xee   : > { %v796_v48 = vpop.f32.mrf.mxu0  ;;  %v916_v49 = vpop.f32.mrf.mxu1 }
  0xef   : > { %v1424_v52 = vadd.f32 %v2563_v46, %v796_v48  ;;  %v1496_v53 = vadd.f32 %v2563_v46, %v916_v49 }
  0xf0   : > { %v798_v50 = vpop.f32.mrf.mxu0  ;;  %v918_v51 = vpop.f32.mrf.mxu1 }
  0xf1   : > { %v1425_v54 = vadd.f32 %v2566_v47, %v798_v50  ;;  %v1497_v55 = vadd.f32 %v2566_v47, %v918_v51  ;;  %v1419_v50 = vsub.s32 2, %v2553_v42 }
  0xf2   : > { %v800_v56 = vpop.f32.mrf.mxu0  ;;  %v920_v57 = vpop.f32.mrf.mxu1 }
  0xf3   : > { %v2144_v58 = vpack.c.bf16 %v1425_v54, %v1424_v52  ;;  %v2192_v59 = vpack.c.bf16 %v1497_v55, %v1496_v53  ;;  %v1427_v62 = vadd.f32 %v2563_v46, %v800_v56  ;;  %v1499_v63 = vadd.f32 %v2563_v46, %v920_v57 }
  0xf4   : > { %v802_v60 = vpop.f32.mrf.mxu0  ;;  %v922_v61 = vpop.f32.mrf.mxu1  ;;  %v2616_v42 = vrot.slane %v2560_v45, %v1419_v50 }
  0xf5   : > { %1840 = vst [vmem:[%s2576_s28] sm:$0xff] %v2144_v58  ;;  %1888 = vst [vmem:[%s2576_s28 + $0x120] sm:$0xff] %v2192_v59  ;;  %v1428_v0 = vadd.f32 %v2566_v47, %v802_v60  ;;  %v1500_v1 = vadd.f32 %v2566_v47, %v922_v61 }
  0xf6   : > { %v806_v2 = vpop.f32.mrf.mxu0  ;;  %v926_v3 = vpop.f32.mrf.mxu1 }
  0xf7   : > { %v2146_v4 = vpack.c.bf16 %v1428_v0, %v1427_v62  ;;  %v2194_v5 = vpack.c.bf16 %v1500_v1, %v1499_v63  ;;  %v1430_v8 = vadd.f32 %v2563_v46, %v806_v2  ;;  %v1502_v9 = vadd.f32 %v2563_v46, %v926_v3 }
  0xf8   : > { %v808_v6 = vpop.f32.mrf.mxu0  ;;  %v928_v7 = vpop.f32.mrf.mxu1 }
  0xf9   : > { %1842 = vst [vmem:[%s2576_s28 + $0xc] sm:$0xff] %v2146_v4  ;;  %1890 = vst [vmem:[%s2576_s28 + $0x12c] sm:$0xff] %v2194_v5  ;;  %v1431_v10 = vadd.f32 %v2566_v47, %v808_v6  ;;  %v1503_v11 = vadd.f32 %v2566_v47, %v928_v7 }
  0xfa   : > { %v810_v12 = vpop.f32.mrf.mxu0  ;;  %v930_v13 = vpop.f32.mrf.mxu1 }
  0xfb   : > { %v2148_v14 = vpack.c.bf16 %v1431_v10, %v1430_v8  ;;  %v2196_v15 = vpack.c.bf16 %v1503_v11, %v1502_v9  ;;  %v1433_v18 = vadd.f32 %v2563_v46, %v810_v12  ;;  %v1505_v19 = vadd.f32 %v2563_v46, %v930_v13 }
  0xfc   : > { %v812_v16 = vpop.f32.mrf.mxu0  ;;  %v932_v17 = vpop.f32.mrf.mxu1 }
  0xfd   : > { %1844 = vst [vmem:[%s2576_s28 + $0x18] sm:$0xff] %v2148_v14  ;;  %1892 = vst [vmem:[%s2576_s28 + $0x138] sm:$0xff] %v2196_v15  ;;  %v1434_v20 = vadd.f32 %v2566_v47, %v812_v16  ;;  %v1506_v21 = vadd.f32 %v2566_v47, %v932_v17 }
  0xfe   : > { %v816_v22 = vpop.f32.mrf.mxu0  ;;  %v936_v23 = vpop.f32.mrf.mxu1 }
  0xff   : > { %v2150_v24 = vpack.c.bf16 %v1434_v20, %v1433_v18  ;;  %v2198_v25 = vpack.c.bf16 %v1506_v21, %v1505_v19  ;;  %v1436_v28 = vadd.f32 %v2563_v46, %v816_v22  ;;  %v1508_v29 = vadd.f32 %v2563_v46, %v936_v23 }
 0x100   : > { %v818_v26 = vpop.f32.mrf.mxu0  ;;  %v938_v27 = vpop.f32.mrf.mxu1 }
 0x101   : > { %1846 = vst [vmem:[%s2576_s28 + $0x24] sm:$0xff] %v2150_v24  ;;  %1894 = vst [vmem:[%s2576_s28 + $0x144] sm:$0xff] %v2198_v25  ;;  %v1437_v30 = vadd.f32 %v2566_v47, %v818_v26  ;;  %v1509_v31 = vadd.f32 %v2566_v47, %v938_v27 }
 0x102   : > { %v820_v32 = vpop.f32.mrf.mxu0  ;;  %v940_v33 = vpop.f32.mrf.mxu1 }
 0x103   : > { %v2152_v34 = vpack.c.bf16 %v1437_v30, %v1436_v28  ;;  %v2200_v35 = vpack.c.bf16 %v1509_v31, %v1508_v29  ;;  %v1439_v38 = vadd.f32 %v2563_v46, %v820_v32  ;;  %v1511_v39 = vadd.f32 %v2563_v46, %v940_v33 }
 0x104   : > { %v822_v36 = vpop.f32.mrf.mxu0  ;;  %v942_v37 = vpop.f32.mrf.mxu1 }
 0x105   : > { %1848 = vst [vmem:[%s2576_s28 + $0x30] sm:$0xff] %v2152_v34  ;;  %1896 = vst [vmem:[%s2576_s28 + $0x150] sm:$0xff] %v2200_v35  ;;  %v1440_v40 = vadd.f32 %v2566_v47, %v822_v36  ;;  %v1512_v41 = vadd.f32 %v2566_v47, %v942_v37 }
 0x106   : > { %v826_v43 = vpop.f32.mrf.mxu0  ;;  %v946_v44 = vpop.f32.mrf.mxu1 }
 0x107   : > { %v2154_v48 = vpack.c.bf16 %v1440_v40, %v1439_v38  ;;  %v2202_v49 = vpack.c.bf16 %v1512_v41, %v1511_v39  ;;  %v1442_v53 = vadd.f32 %v2563_v46, %v826_v43  ;;  %v1514_v54 = vadd.f32 %v2563_v46, %v946_v44 }
 0x108   : > { %v828_v51 = vpop.f32.mrf.mxu0  ;;  %v948_v52 = vpop.f32.mrf.mxu1 }
 0x109   : > { %1850 = vst [vmem:[%s2576_s28 + $0x3c] sm:$0xff] %v2154_v48  ;;  %1898 = vst [vmem:[%s2576_s28 + $0x15c] sm:$0xff] %v2202_v49  ;;  %v1443_v55 = vadd.f32 %v2566_v47, %v828_v51  ;;  %v1515_v56 = vadd.f32 %v2566_v47, %v948_v52 }
 0x10a   : > { %v830_v57 = vpop.f32.mrf.mxu0  ;;  %v950_v58 = vpop.f32.mrf.mxu1 }
 0x10b   : > { %v2156_v59 = vpack.c.bf16 %v1443_v55, %v1442_v53  ;;  %v2204_v60 = vpack.c.bf16 %v1515_v56, %v1514_v54  ;;  %v1445_v63 = vadd.f32 %v2563_v46, %v830_v57  ;;  %v1517_v0 = vadd.f32 %v2563_v46, %v950_v58 }
 0x10c   : > { %v832_v61 = vpop.f32.mrf.mxu0  ;;  %v952_v62 = vpop.f32.mrf.mxu1 }
 0x10d   : > { %1852 = vst [vmem:[%s2576_s28 + $0x48] sm:$0xff] %v2156_v59  ;;  %1900 = vst [vmem:[%s2576_s28 + $0x168] sm:$0xff] %v2204_v60  ;;  %v1446_v1 = vadd.f32 %v2566_v47, %v832_v61  ;;  %v1518_v2 = vadd.f32 %v2566_v47, %v952_v62 }
 0x10e   : > { %v836_v3 = vpop.f32.mrf.mxu0  ;;  %v2250_v4 = vpop.f32.mrf.mxu1 }
 0x10f   : > { %v2158_v5 = vpack.c.bf16 %v1446_v1, %v1445_v63  ;;  %v2206_v45 = vpack.c.bf16 %v1518_v2, %v1517_v0  ;;  %v1432_v6 = vadd.f32 %v2250_v4, %v2616_v42  ;;  %v1448_v9 = vadd.f32 %v2563_v46, %v836_v3 }
 0x110   : > { %v838_v7 = vpop.f32.mrf.mxu0  ;;  %v989_v8 = vpop.f32.mrf.mxu1 }
 0x111   : > { %1854 = vst [vmem:[%s2576_s28 + $0x54] sm:$0xff] %v2158_v5  ;;  %1902 = vst [vmem:[%s2576_s28 + $0x174] sm:$0xff] %v2206_v45  ;;  %v2149_v10 = vpack.c.bf16 %v1432_v6, %v1432_v6  ;;  %v1449_v11 = vadd.f32 %v2566_v47, %v838_v7  ;;  %v1426_v12 = vadd.f32 %v2616_v42, %v989_v8 }
 0x112   : > { %v840_v13 = vpop.f32.mrf.mxu0  ;;  %v2251_v14 = vpop.f32.mrf.mxu1 }
 0x113   : > { %1845 = vst [vmem:[%s2576_s28 + $0x20] sm:$0xf] %v2149_v10  ;;  %v2160_v15 = vpack.c.bf16 %v1449_v11, %v1448_v9  ;;  %v2145_v16 = vpack.c.bf16 %v1426_v12, %v1426_v12  ;;  %v1435_v17 = vadd.f32 %v2251_v14, %v2616_v42  ;;  %v1451_v20 = vadd.f32 %v2563_v46, %v840_v13 }
 0x114   : > { %v842_v18 = vpop.f32.mrf.mxu0  ;;  %v992_v19 = vpop.f32.mrf.mxu1 }
 0x115   : > { %1856 = vst [vmem:[%s2576_s28 + $0x60] sm:$0xff] %v2160_v15  ;;  %1841 = vst [vmem:[%s2576_s28 + $0x8] sm:$0xf] %v2145_v16  ;;  %v2151_v21 = vpack.c.bf16 %v1435_v17, %v1435_v17  ;;  %v1452_v22 = vadd.f32 %v2566_v47, %v842_v18  ;;  %v1429_v23 = vadd.f32 %v2616_v42, %v992_v19 }
 0x116   : > { %v846_v24 = vpop.f32.mrf.mxu0  ;;  %v2254_v25 = vpop.f32.mrf.mxu1 }
 0x117   : > { %1847 = vst [vmem:[%s2576_s28 + $0x2c] sm:$0xf] %v2151_v21  ;;  %v2162_v26 = vpack.c.bf16 %v1452_v22, %v1451_v20  ;;  %v2147_v27 = vpack.c.bf16 %v1429_v23, %v1429_v23  ;;  %v1444_v28 = vadd.f32 %v2254_v25, %v2616_v42  ;;  %v1454_v31 = vadd.f32 %v2563_v46, %v846_v24 }
 0x118   : > { %v848_v29 = vpop.f32.mrf.mxu0  ;;  %v1005_v30 = vpop.f32.mrf.mxu1 }
 0x119   : > { %1858 = vst [vmem:[%s2576_s28 + $0x6c] sm:$0xff] %v2162_v26  ;;  %1843 = vst [vmem:[%s2576_s28 + $0x14] sm:$0xf] %v2147_v27  ;;  %v2157_v32 = vpack.c.bf16 %v1444_v28, %v1444_v28  ;;  %v1455_v33 = vadd.f32 %v2566_v47, %v848_v29  ;;  %v1438_v34 = vadd.f32 %v2616_v42, %v1005_v30 }
 0x11a   : > { %v850_v35 = vpop.f32.mrf.mxu0  ;;  %v2255_v36 = vpop.f32.mrf.mxu1 }
 0x11b   : > { %1853 = vst [vmem:[%s2576_s28 + $0x50] sm:$0xf] %v2157_v32  ;;  %v2164_v37 = vpack.c.bf16 %v1455_v33, %v1454_v31  ;;  %v2153_v38 = vpack.c.bf16 %v1438_v34, %v1438_v34  ;;  %v1447_v39 = vadd.f32 %v2255_v36, %v2616_v42  ;;  %v1457_v43 = vadd.f32 %v2563_v46, %v850_v35 }
 0x11c   : > { %v852_v40 = vpop.f32.mrf.mxu0  ;;  %v1008_v41 = vpop.f32.mrf.mxu1 }
 0x11d   : > { %1860 = vst [vmem:[%s2576_s28 + $0x78] sm:$0xff] %v2164_v37  ;;  %1849 = vst [vmem:[%s2576_s28 + $0x38] sm:$0xf] %v2153_v38  ;;  %v2159_v44 = vpack.c.bf16 %v1447_v39, %v1447_v39  ;;  %v1458_v48 = vadd.f32 %v2566_v47, %v852_v40  ;;  %v1441_v49 = vadd.f32 %v2616_v42, %v1008_v41 }
 0x11e   : > { %v856_v50 = vpop.f32.mrf.mxu0  ;;  %v2258_v51 = vpop.f32.mrf.mxu1 }
 0x11f   : > { %1855 = vst [vmem:[%s2576_s28 + $0x5c] sm:$0xf] %v2159_v44  ;;  %v2166_v52 = vpack.c.bf16 %v1458_v48, %v1457_v43  ;;  %v2155_v53 = vpack.c.bf16 %v1441_v49, %v1441_v49  ;;  %v1456_v54 = vadd.f32 %v2258_v51, %v2616_v42  ;;  %v1460_v57 = vadd.f32 %v2563_v46, %v856_v50 }
 0x120   : > { %v858_v55 = vpop.f32.mrf.mxu0  ;;  %v1021_v56 = vpop.f32.mrf.mxu1 }
 0x121   : > { %1862 = vst [vmem:[%s2576_s28 + $0x84] sm:$0xff] %v2166_v52  ;;  %1851 = vst [vmem:[%s2576_s28 + $0x44] sm:$0xf] %v2155_v53  ;;  %v2165_v58 = vpack.c.bf16 %v1456_v54, %v1456_v54  ;;  %v1461_v59 = vadd.f32 %v2566_v47, %v858_v55  ;;  %v1450_v60 = vadd.f32 %v2616_v42, %v1021_v56 }
 0x122   : > { %v860_v61 = vpop.f32.mrf.mxu0  ;;  %v2259_v62 = vpop.f32.mrf.mxu1 }
 0x123   : > { %1861 = vst [vmem:[%s2576_s28 + $0x80] sm:$0xf] %v2165_v58  ;;  %v2168_v63 = vpack.c.bf16 %v1461_v59, %v1460_v57  ;;  %v2161_v0 = vpack.c.bf16 %v1450_v60, %v1450_v60  ;;  %v1459_v1 = vadd.f32 %v2259_v62, %v2616_v42  ;;  %v1463_v4 = vadd.f32 %v2563_v46, %v860_v61 }
 0x124   : > { %v862_v2 = vpop.f32.mrf.mxu0  ;;  %v1024_v3 = vpop.f32.mrf.mxu1 }
 0x125   : > { %1864 = vst [vmem:[%s2576_s28 + $0x90] sm:$0xff] %v2168_v63  ;;  %1857 = vst [vmem:[%s2576_s28 + $0x68] sm:$0xf] %v2161_v0  ;;  %v2167_v5 = vpack.c.bf16 %v1459_v1, %v1459_v1  ;;  %v1464_v45 = vadd.f32 %v2566_v47, %v862_v2  ;;  %v1453_v6 = vadd.f32 %v2616_v42, %v1024_v3 }
 0x126   : > { %v866_v7 = vpop.f32.mrf.mxu0  ;;  %v2262_v8 = vpop.f32.mrf.mxu1 }
 0x127   : > { %1863 = vst [vmem:[%s2576_s28 + $0x8c] sm:$0xf] %v2167_v5  ;;  %v2170_v9 = vpack.c.bf16 %v1464_v45, %v1463_v4  ;;  %v2163_v10 = vpack.c.bf16 %v1453_v6, %v1453_v6  ;;  %v1468_v11 = vadd.f32 %v2262_v8, %v2616_v42  ;;  %v1466_v14 = vadd.f32 %v2563_v46, %v866_v7 }
 0x128   : > { %v868_v12 = vpop.f32.mrf.mxu0  ;;  %v1037_v13 = vpop.f32.mrf.mxu1 }
 0x129   : > { %1866 = vst [vmem:[%s2576_s28 + $0x9c] sm:$0xff] %v2170_v9  ;;  %1859 = vst [vmem:[%s2576_s28 + $0x74] sm:$0xf] %v2163_v10  ;;  %v2173_v15 = vpack.c.bf16 %v1468_v11, %v1468_v11  ;;  %v1467_v16 = vadd.f32 %v2566_v47, %v868_v12  ;;  %v1462_v17 = vadd.f32 %v2616_v42, %v1037_v13 }
 0x12a   : > { %v870_v18 = vpop.f32.mrf.mxu0  ;;  %v2263_v19 = vpop.f32.mrf.mxu1 }
 0x12b   : > { %1869 = vst [vmem:[%s2576_s28 + $0xb0] sm:$0xf] %v2173_v15  ;;  %v2172_v20 = vpack.c.bf16 %v1467_v16, %v1466_v14  ;;  %v2169_v21 = vpack.c.bf16 %v1462_v17, %v1462_v17  ;;  %v1471_v22 = vadd.f32 %v2263_v19, %v2616_v42  ;;  %v1469_v25 = vadd.f32 %v2563_v46, %v870_v18 }
 0x12c   : > { %v872_v23 = vpop.f32.mrf.mxu0  ;;  %v1040_v24 = vpop.f32.mrf.mxu1 }
 0x12d   : > { %1868 = vst [vmem:[%s2576_s28 + $0xa8] sm:$0xff] %v2172_v20  ;;  %1865 = vst [vmem:[%s2576_s28 + $0x98] sm:$0xf] %v2169_v21  ;;  %v2175_v26 = vpack.c.bf16 %v1471_v22, %v1471_v22  ;;  %v1470_v27 = vadd.f32 %v2566_v47, %v872_v23  ;;  %v1465_v28 = vadd.f32 %v2616_v42, %v1040_v24 }
 0x12e   : > { %v876_v29 = vpop.f32.mrf.mxu0  ;;  %v2266_v30 = vpop.f32.mrf.mxu1 }
 0x12f   : > { %1871 = vst [vmem:[%s2576_s28 + $0xbc] sm:$0xf] %v2175_v26  ;;  %v2174_v31 = vpack.c.bf16 %v1470_v27, %v1469_v25  ;;  %v2171_v32 = vpack.c.bf16 %v1465_v28, %v1465_v28  ;;  %v1480_v33 = vadd.f32 %v2266_v30, %v2616_v42  ;;  %v1472_v36 = vadd.f32 %v2563_v46, %v876_v29 }
 0x130   : > { %v878_v34 = vpop.f32.mrf.mxu0  ;;  %v1053_v35 = vpop.f32.mrf.mxu1 }
 0x131   : > { %1870 = vst [vmem:[%s2576_s28 + $0xb4] sm:$0xff] %v2174_v31  ;;  %1867 = vst [vmem:[%s2576_s28 + $0xa4] sm:$0xf] %v2171_v32  ;;  %v2181_v37 = vpack.c.bf16 %v1480_v33, %v1480_v33  ;;  %v1473_v38 = vadd.f32 %v2566_v47, %v878_v34  ;;  %v1474_v39 = vadd.f32 %v2616_v42, %v1053_v35 }
 0x132   : > { %v880_v40 = vpop.f32.mrf.mxu0  ;;  %v2267_v41 = vpop.f32.mrf.mxu1 }
 0x133   : > { %1877 = vst [vmem:[%s2576_s28 + $0xe0] sm:$0xf] %v2181_v37  ;;  %v2176_v43 = vpack.c.bf16 %v1473_v38, %v1472_v36  ;;  %v2177_v44 = vpack.c.bf16 %v1474_v39, %v1474_v39  ;;  %v1483_v48 = vadd.f32 %v2267_v41, %v2616_v42  ;;  %v1475_v51 = vadd.f32 %v2563_v46, %v880_v40 }
 0x134   : > { %v882_v49 = vpop.f32.mrf.mxu0  ;;  %v1056_v50 = vpop.f32.mrf.mxu1 }
 0x135   : > { %1872 = vst [vmem:[%s2576_s28 + $0xc0] sm:$0xff] %v2176_v43  ;;  %1873 = vst [vmem:[%s2576_s28 + $0xc8] sm:$0xf] %v2177_v44  ;;  %v2183_v52 = vpack.c.bf16 %v1483_v48, %v1483_v48  ;;  %v1476_v53 = vadd.f32 %v2566_v47, %v882_v49  ;;  %v1477_v54 = vadd.f32 %v2616_v42, %v1056_v50 }
 0x136   : > { %v886_v55 = vpop.f32.mrf.mxu0  ;;  %v2270_v56 = vpop.f32.mrf.mxu1 }
 0x137   : > { %1879 = vst [vmem:[%s2576_s28 + $0xec] sm:$0xf] %v2183_v52  ;;  %v2178_v57 = vpack.c.bf16 %v1476_v53, %v1475_v51  ;;  %v2179_v58 = vpack.c.bf16 %v1477_v54, %v1477_v54  ;;  %v1492_v59 = vadd.f32 %v2270_v56, %v2616_v42  ;;  %v1478_v62 = vadd.f32 %v2563_v46, %v886_v55 }
 0x138   : > { %v888_v60 = vpop.f32.mrf.mxu0  ;;  %v1069_v61 = vpop.f32.mrf.mxu1 }
 0x139   : > { %1874 = vst [vmem:[%s2576_s28 + $0xcc] sm:$0xff] %v2178_v57  ;;  %1875 = vst [vmem:[%s2576_s28 + $0xd4] sm:$0xf] %v2179_v58  ;;  %v2189_v63 = vpack.c.bf16 %v1492_v59, %v1492_v59  ;;  %v1479_v0 = vadd.f32 %v2566_v47, %v888_v60  ;;  %v1486_v1 = vadd.f32 %v2616_v42, %v1069_v61 }
 0x13a   : > { %v890_v2 = vpop.f32.mrf.mxu0  ;;  %v2271_v3 = vpop.f32.mrf.mxu1 }
 0x13b   : > { %1885 = vst [vmem:[%s2576_s28 + $0x110] sm:$0xf] %v2189_v63  ;;  %v2180_v4 = vpack.c.bf16 %v1479_v0, %v1478_v62  ;;  %v2185_v5 = vpack.c.bf16 %v1486_v1, %v1486_v1  ;;  %v1495_v45 = vadd.f32 %v2271_v3, %v2616_v42  ;;  %v1481_v8 = vadd.f32 %v2563_v46, %v890_v2 }
 0x13c   : > { %v892_v6 = vpop.f32.mrf.mxu0  ;;  %v1072_v7 = vpop.f32.mrf.mxu1 }
 0x13d   : > { %1876 = vst [vmem:[%s2576_s28 + $0xd8] sm:$0xff] %v2180_v4  ;;  %1881 = vst [vmem:[%s2576_s28 + $0xf8] sm:$0xf] %v2185_v5  ;;  %v2191_v9 = vpack.c.bf16 %v1495_v45, %v1495_v45  ;;  %v1482_v10 = vadd.f32 %v2566_v47, %v892_v6  ;;  %v1489_v11 = vadd.f32 %v2616_v42, %v1072_v7 }
 0x13e   : > { %v896_v12 = vpop.f32.mrf.mxu0  ;;  %v2274_v13 = vpop.f32.mrf.mxu1 }
 0x13f   : > { %1887 = vst [vmem:[%s2576_s28 + $0x11c] sm:$0xf] %v2191_v9  ;;  %v2182_v14 = vpack.c.bf16 %v1482_v10, %v1481_v8  ;;  %v2187_v15 = vpack.c.bf16 %v1489_v11, %v1489_v11  ;;  %v1504_v16 = vadd.f32 %v2274_v13, %v2616_v42  ;;  %v1484_v19 = vadd.f32 %v2563_v46, %v896_v12 }
 0x140   : > { %v898_v17 = vpop.f32.mrf.mxu0  ;;  %v1085_v18 = vpop.f32.mrf.mxu1 }
 0x141   : > { %1878 = vst [vmem:[%s2576_s28 + $0xe4] sm:$0xff] %v2182_v14  ;;  %1883 = vst [vmem:[%s2576_s28 + $0x104] sm:$0xf] %v2187_v15  ;;  %v2197_v20 = vpack.c.bf16 %v1504_v16, %v1504_v16  ;;  %v1485_v21 = vadd.f32 %v2566_v47, %v898_v17  ;;  %v1498_v22 = vadd.f32 %v2616_v42, %v1085_v18 }
 0x142   : > { %v900_v23 = vpop.f32.mrf.mxu0  ;;  %v2275_v24 = vpop.f32.mrf.mxu1 }
 0x143   : > { %1893 = vst [vmem:[%s2576_s28 + $0x140] sm:$0xf] %v2197_v20  ;;  %v2184_v25 = vpack.c.bf16 %v1485_v21, %v1484_v19  ;;  %v2193_v26 = vpack.c.bf16 %v1498_v22, %v1498_v22  ;;  %v1507_v27 = vadd.f32 %v2275_v24, %v2616_v42  ;;  %v1487_v30 = vadd.f32 %v2563_v46, %v900_v23 }
 0x144   : > { %v902_v28 = vpop.f32.mrf.mxu0  ;;  %v1088_v29 = vpop.f32.mrf.mxu1 }
 0x145   : > { %1880 = vst [vmem:[%s2576_s28 + $0xf0] sm:$0xff] %v2184_v25  ;;  %1889 = vst [vmem:[%s2576_s28 + $0x128] sm:$0xf] %v2193_v26  ;;  %v2199_v31 = vpack.c.bf16 %v1507_v27, %v1507_v27  ;;  %v1488_v32 = vadd.f32 %v2566_v47, %v902_v28  ;;  %v1501_v33 = vadd.f32 %v2616_v42, %v1088_v29 }
 0x146   : > { %v906_v34 = vpop.f32.mrf.mxu0  ;;  %v2278_v35 = vpop.f32.mrf.mxu1 }
 0x147   : > { %1895 = vst [vmem:[%s2576_s28 + $0x14c] sm:$0xf] %v2199_v31  ;;  %v2186_v36 = vpack.c.bf16 %v1488_v32, %v1487_v30  ;;  %v2195_v37 = vpack.c.bf16 %v1501_v33, %v1501_v33  ;;  %v1516_v38 = vadd.f32 %v2278_v35, %v2616_v42  ;;  %v1490_v41 = vadd.f32 %v2563_v46, %v906_v34 }
 0x148   : > { %v908_v39 = vpop.f32.mrf.mxu0  ;;  %v1101_v40 = vpop.f32.mrf.mxu1 }
 0x149   : > { %1882 = vst [vmem:[%s2576_s28 + $0xfc] sm:$0xff] %v2186_v36  ;;  %1891 = vst [vmem:[%s2576_s28 + $0x134] sm:$0xf] %v2195_v37  ;;  %v2205_v43 = vpack.c.bf16 %v1516_v38, %v1516_v38  ;;  %v1491_v44 = vadd.f32 %v2566_v47, %v908_v39  ;;  %v1510_v48 = vadd.f32 %v2616_v42, %v1101_v40 }
 0x14a   : > { %v910_v49 = vpop.f32.mrf.mxu0  ;;  %v2279_v50 = vpop.f32.mrf.mxu1 }
 0x14b   : > { %1901 = vst [vmem:[%s2576_s28 + $0x170] sm:$0xf] %v2205_v43  ;;  %v2188_v51 = vpack.c.bf16 %v1491_v44, %v1490_v41  ;;  %v2201_v52 = vpack.c.bf16 %v1510_v48, %v1510_v48  ;;  %v1519_v53 = vadd.f32 %v2279_v50, %v2616_v42  ;;  %v1493_v56 = vadd.f32 %v2563_v46, %v910_v49 }
 0x14c   : > { %v912_v54 = vpop.f32.mrf.mxu0  ;;  %v1104_v55 = vpop.f32.mrf.mxu1 }
 0x14d   : > { %1884 = vst [vmem:[%s2576_s28 + $0x108] sm:$0xff] %v2188_v51  ;;  %1897 = vst [vmem:[%s2576_s28 + $0x158] sm:$0xf] %v2201_v52  ;;  %v2207_v57 = vpack.c.bf16 %v1519_v53, %v1519_v53  ;;  %v1494_v58 = vadd.f32 %v2566_v47, %v912_v54  ;;  %v1513_v59 = vadd.f32 %v2616_v42, %v1104_v55 }
 0x14f   : > { %1903 = vst [vmem:[%s2576_s28 + $0x17c] sm:$0xf] %v2207_v57  ;;  %v2190_v60 = vpack.c.bf16 %v1494_v58, %v1493_v56  ;;  %v2203_v61 = vpack.c.bf16 %v1513_v59, %v1513_v59 }
 0x151   : > { %1886 = vst [vmem:[%s2576_s28 + $0x114] sm:$0xff] %v2190_v60  ;;  %1899 = vst [vmem:[%s2576_s28 + $0x164] sm:$0xf] %v2203_v61 }
 0x152 PF: > { %s13_s14 = sadd.s32 1, %s2392_s14   ;;  %s2751_s12 = smov %s2388_s13 }
 0x153   : > { %p10_p5 = scmp.ge.s32.totalorder %s13_s14, 4   ;;  %s2752_s13 = smov %s2754_s15 }
 0x155   :  { %12 = sbr.rel (!%p10_p5) target bundleno = 2 (0x2), region = 76 }

</bundles_post_ra>
